<compile_context>
chip_gen: v7x
topology: tpu7x:2x2x1
jax: 0.10.0
libtpu: 0.0.40
codegen_flags: <defaults>
</compile_context>

<pallas_src>
import math
import functools

import jax
import jax.numpy as jnp
import numpy as np
from jax.experimental import pallas as pl
from jax.experimental.pallas import tpu as pltpu


def decoder_layer_kernel(tgt_ref, enc_ref,
                         wqkv1_ref, wfc1_ref, wq2_ref, wkv2_ref, wfc2_ref,
                         wc1_ref, wc2_ref, pb_ref,
                         out_ref, *, n_heads, strip):
    D = tgt_ref.shape[0]            # d_model (sublane axis)
    pf = wc1_ref.shape[0]           # pf_dim
    R = pb_ref.shape[0] // 10       # packed-param row stride (multiple of 8)
    hd = D // n_heads               # head_dim (== 8 in this config)
    n_strips = tgt_ref.shape[1] // strip

    def pcol(j, n):
        # j-th packed (n,)-vector as an (n, 1) column -> lane-broadcasts cheaply.
        return pb_ref[j * R: j * R + n, :]

    def hdot(w_ref, x):
        # x: (K, W) f32.  w_ref: bf16 [W_hi | W_lo | W_hi] stacked along K
        # (host-side).  Pairing with [x_hi; x_hi; x_lo] gives
        #   W_hi x_hi + W_lo x_hi + W_hi x_lo  ~=  W x  to ~2^-17 relative,
        # from a single native bf16 MXU pass with f32 accumulation (vs the
        # multi-pass emulation a HIGHEST-precision f32 matmul would lower to).
        x_hi = x.astype(jnp.bfloat16).astype(jnp.float32)
        xs = jnp.concatenate([x, x, x - x_hi], axis=0).astype(jnp.bfloat16)
        return jnp.dot(w_ref[...], xs, preferred_element_type=jnp.float32,
                       precision=jax.lax.Precision.DEFAULT)

    def layernorm(x, w, b, eps=1e-5):
        mu = jnp.mean(x, axis=0, keepdims=True)        # reduce over channels
        xc = x - mu
        var = jnp.mean(xc * xc, axis=0, keepdims=True)
        return xc * jax.lax.rsqrt(var + eps) * w + b   # w, b: (D,1) columns

    def head_softmax_weight_v(s, v):
        # Exact per-head softmax over head_dim, multiplied elementwise by v.
        # hd == 8 makes the reshape layout-preserving (one sublane tile per
        # head): a single batched sublane reduce instead of per-head
        # slice + concat round trips.
        w = s.shape[-1]
        s3 = s.reshape(n_heads, hd, w)
        v3 = v.reshape(n_heads, hd, w)
        mh = jnp.max(s3, axis=1, keepdims=True)
        eh = jnp.exp(s3 - mh)
        dh = jnp.sum(eh, axis=1, keepdims=True)
        inv = pl.reciprocal(dh, approx=True)           # EUP vrcp, dh >= 1
        return (v3 * (eh * inv)).reshape(D, w)

    def strip_body(i, carry):
        c0 = pl.multiple_of(i * strip, strip)
        cols = pl.ds(c0, strip)
        tgt = tgt_ref[:, cols]
        enc = enc_ref[:, cols]

        # ---- self-attention + residual + norm1 (dropout == identity) -------
        # 1/sqrt(d_model) is pre-folded into the Q rows of wqkv1 (host-side).
        qkv = hdot(wqkv1_ref, tgt)
        q, k, v = qkv[0:D], qkv[D:2 * D], qkv[2 * D:3 * D]
        o = head_softmax_weight_v(q * k, v)
        t2 = hdot(wfc1_ref, o) + pcol(0, D)
        tgt = layernorm(tgt + t2, pcol(1, D), pcol(2, D))

        # ---- encoder-attention + residual + norm2 ---------------------------
        q = hdot(wq2_ref, tgt)
        kv = hdot(wkv2_ref, enc)
        k, v = kv[0:D], kv[D:2 * D]
        o = head_softmax_weight_v(q * k, v)
        t2 = hdot(wfc2_ref, o) + pcol(3, D)
        x = layernorm(tgt + t2, pcol(4, D), pcol(5, D))

        # ---- conv1(1x1) -> relu -> conv2(1x1)  (channel-wise linears) -------
        y = jnp.maximum(hdot(wc1_ref, x) + pcol(6, pf), 0.0)
        y = hdot(wc2_ref, y) + pcol(7, D)

        out_ref[:, cols] = layernorm(x + y, pcol(8, D),
                                     pcol(9, D)).astype(out_ref.dtype)
        return carry

    jax.lax.fori_loop(0, n_strips, strip_body, 0, unroll=True)


def _round_up(x, m):
    return ((x + m - 1) // m) * m


def _choose_tiles(M, tile_m, strip=128):
    """Block tile T (multiple of `strip`) and padded extent M_pad (multiple of
    T, >= 2*T so the grid always has >= 2 parallel steps)."""
    tile_m = max(strip, (int(tile_m) // strip) * strip)
    m_strips = _round_up(M, strip)
    T = min(tile_m, max(strip, (m_strips // 4 // strip) * strip))
    M_pad = max(2 * T, _round_up(m_strips, T))
    return T, M_pad


def prepare_decoder_params(params):
    """Host-side weight prep: fused QKV / KV, softmax scale folded into Q,
    bf16 hi/lo split stacked along the contraction axis, and the 10 tiny
    bias / LayerNorm vectors packed into one column array."""
    D = params["wq1"].shape[0]
    pf = params["wc1"].shape[1]
    inv_sqrt_d = 1.0 / math.sqrt(D)
    f32 = jnp.float32

    def stack3(w):                                  # w: (out, in) f32
        w = w.astype(f32)
        w_hi = w.astype(jnp.bfloat16)
        w_lo = (w - w_hi.astype(f32)).astype(jnp.bfloat16)
        return jnp.concatenate([w_hi, w_lo, w_hi], axis=1)   # (out, 3*in) bf16

    wqkv1 = stack3(jnp.concatenate(
        [params["wq1"].T * inv_sqrt_d, params["wk1"].T, params["wv1"].T], axis=0))
    wfc1 = stack3(params["wfc1"].T)
    wq2 = stack3(params["wq2"].T * inv_sqrt_d)
    wkv2 = stack3(jnp.concatenate([params["wk2"].T, params["wv2"].T], axis=0))
    wfc2 = stack3(params["wfc2"].T)
    wc1 = stack3(params["wc1"].T)                   # (pf, 3D)
    wc2 = stack3(params["wc2"].T)                   # (D, 3pf)

    R = _round_up(max(D, pf), 8)

    def vec(name):
        v = params[name].reshape(-1).astype(f32)
        return jnp.pad(v, (0, R - v.shape[0]))

    packed = jnp.stack(
        [vec("bfc1"), vec("ln1w"), vec("ln1b"),
         vec("bfc2"), vec("ln2w"), vec("ln2b"),
         vec("bc1"), vec("bc2"), vec("ln3w"), vec("ln3b")],
        axis=0).reshape(10 * R, 1)

    return (wqkv1, wfc1, wq2, wkv2, wfc2, wc1, wc2, packed)


@functools.partial(jax.jit, static_argnames=("n_heads", "tile_m"))
def decoder_layer_pallas_cf(tgt_cf, enc_cf, kparams, n_heads, tile_m=1024):
    """Channels-first entry point: tgt_cf / enc_cf are (d_model, M); returns
    (d_model, M).  Use this (plus prepare_decoder_params) when stacking layers
    so the relayout transposes are hoisted out of the per-layer path."""
    D, M = tgt_cf.shape
    wqkv1, wfc1, wq2, wkv2, wfc2, wc1, wc2, packed = kparams
    strip = 128
    T, M_pad = _choose_tiles(M, tile_m, strip)
    if M_pad != M:
        pad = ((0, 0), (0, M_pad - M))
        tgt_cf = jnp.pad(tgt_cf, pad)               # zero columns are benign
        enc_cf = jnp.pad(enc_cf, pad)
    grid = (M_pad // T,)

    def full(a):
        return pl.BlockSpec(a.shape, lambda i: (0, 0))

    dspec = pl.BlockSpec((D, T), lambda i: (0, i))

    out = pl.pallas_call(
        functools.partial(decoder_layer_kernel, n_heads=n_heads, strip=strip),
        out_shape=jax.ShapeDtypeStruct((D, M_pad), jnp.float32),
        grid_spec=pltpu.PrefetchScalarGridSpec(
            num_scalar_prefetch=0,
            grid=grid,
            in_specs=[dspec, dspec,
                      full(wqkv1), full(wfc1), full(wq2), full(wkv2),
                      full(wfc2), full(wc1), full(wc2), full(packed)],
            out_specs=pl.BlockSpec((D, T), lambda i: (0, i)),
        ),
        compiler_params=pltpu.CompilerParams(
            dimension_semantics=("parallel",)),
    )(tgt_cf, enc_cf, wqkv1, wfc1, wq2, wkv2, wfc2, wc1, wc2, packed)

    return out[:, :M]


@functools.partial(jax.jit, static_argnames=("n_heads", "tile_m"))
def decoder_layer_pallas(tgt, enc_src, params, n_heads, tile_m=1024):
    S, NB, D = tgt.shape
    M = S * NB
    kparams = prepare_decoder_params(params)
    tgt_cf = tgt.reshape(M, D).T.astype(jnp.float32)
    enc_cf = enc_src.reshape(M, D).T.astype(jnp.float32)
    out_cf = decoder_layer_pallas_cf(tgt_cf, enc_cf, kparams,
                                     n_heads=n_heads, tile_m=tile_m)
    return out_cf.T.reshape(S, NB, D)


def decoder_layer_reference(tgt, enc_src, params, n_heads):
    """Pure-JAX mirror of the PyTorch forward (eval-mode dropout)."""
    D = tgt.shape[-1]
    hd = D // n_heads

    def mha(q_in, kv_in, wq, wk, wv, wfc, bfc):
        S, NB, _ = q_in.shape
        q = jnp.einsum("snd,de->sne", q_in, wq)
        k = jnp.einsum("snd,de->sne", kv_in, wk)
        v = jnp.einsum("snd,de->sne", kv_in, wv)
        qh = q.reshape(S, NB, n_heads, hd)
        kh = k.reshape(S, NB, n_heads, hd)
        vh = v.reshape(S, NB, n_heads, hd)
        p = jax.nn.softmax(qh * kh / math.sqrt(D), axis=-1)
        o = (vh * p).reshape(S, NB, D)
        return jnp.einsum("snd,de->sne", o, wfc) + bfc[0]

    def ln(x, w, b):
        mu = x.mean(-1, keepdims=True)
        var = ((x - mu) ** 2).mean(-1, keepdims=True)
        return (x - mu) / jnp.sqrt(var + 1e-5) * w[0] + b[0]

    t2 = mha(tgt, tgt, params["wq1"], params["wk1"], params["wv1"],
             params["wfc1"], params["bfc1"])
    t = ln(tgt + t2, params["ln1w"], params["ln1b"])
    t2 = mha(t, enc_src, params["wq2"], params["wk2"], params["wv2"],
             params["wfc2"], params["bfc2"])
    x = ln(t + t2, params["ln2w"], params["ln2b"])
    y = jnp.maximum(jnp.einsum("snd,dp->snp", x, params["wc1"]) + params["bc1"][0], 0.0)
    y = jnp.einsum("snp,pd->snd", y, params["wc2"]) + params["bc2"][0]
    return ln(x + y, params["ln3w"], params["ln3b"])


def _xavier(key, shape):
    fan_in, fan_out = shape
    bound = math.sqrt(6.0 / (fan_in + fan_out))
    return jax.random.uniform(key, shape, jnp.float32, -bound, bound)


def _uniform(key, shape, bound):
    return jax.random.uniform(key, shape, jnp.float32, -bound, bound)


if __name__ == "__main__":
    # Accurate reference einsums; the kernel's dots set their precision
    # explicitly (bf16 operands, f32 accumulate) and ignore this config.
    jax.config.update("jax_default_matmul_precision", "float32")

    d_model, n_heads, pf_dim = 32, 4, 64
    n_nodes, batch_size, seq = 4, 2, 8
    NB = n_nodes * batch_size

    key = jax.random.PRNGKey(0)
    k_tgt, k_enc, k_par = jax.random.split(key, 3)
    tgt = jax.random.normal(k_tgt, (seq, NB, d_model), jnp.float32)
    enc_src = jax.random.normal(k_enc, (seq, NB, d_model), jnp.float32)

    pk = jax.random.split(k_par, 14)
    # Linear / conv weights are stored pre-transposed as (in, out).
    params = {
        "wq1": _xavier(pk[0], (d_model, d_model)),
        "wk1": _xavier(pk[1], (d_model, d_model)),
        "wv1": _xavier(pk[2], (d_model, d_model)),
        "wfc1": _xavier(pk[3], (d_model, d_model)),
        "bfc1": _uniform(pk[4], (1, d_model), 1.0 / math.sqrt(d_model)),
        "wq2": _xavier(pk[5], (d_model, d_model)),
        "wk2": _xavier(pk[6], (d_model, d_model)),
        "wv2": _xavier(pk[7], (d_model, d_model)),
        "wfc2": _xavier(pk[8], (d_model, d_model)),
        "bfc2": _uniform(pk[9], (1, d_model), 1.0 / math.sqrt(d_model)),
        "ln1w": jnp.ones((1, d_model), jnp.float32),
        "ln1b": jnp.zeros((1, d_model), jnp.float32),
        "ln2w": jnp.ones((1, d_model), jnp.float32),
        "ln2b": jnp.zeros((1, d_model), jnp.float32),
        "ln3w": jnp.ones((1, d_model), jnp.float32),
        "ln3b": jnp.zeros((1, d_model), jnp.float32),
        "wc1": _xavier(pk[10], (d_model, pf_dim)),
        "bc1": _uniform(pk[11], (1, pf_dim), 1.0 / math.sqrt(d_model)),
        "wc2": _xavier(pk[12], (pf_dim, d_model)),
        "bc2": _uniform(pk[13], (1, d_model), 1.0 / math.sqrt(pf_dim)),
    }

    out = decoder_layer_pallas(tgt, enc_src, params, n_heads)
    out = jax.block_until_ready(out)

    ref = decoder_layer_reference(tgt, enc_src, params, n_heads)
    np.testing.assert_allclose(np.asarray(out), np.asarray(ref), rtol=2e-3, atol=2e-3)

    print("KERNEL_OK")
</pallas_src>

<mosaic_0001>
module attributes {stable_mosaic.version = 11 : i64} {
  func.func @decoder_layer_kernel(%arg0: i32, %arg1: memref<32x128xf32, #tpu.memory_space<vmem>>, %arg2: memref<32x128xf32, #tpu.memory_space<vmem>>, %arg3: memref<96x96xbf16, #tpu.memory_space<vmem>>, %arg4: memref<32x96xbf16, #tpu.memory_space<vmem>>, %arg5: memref<32x96xbf16, #tpu.memory_space<vmem>>, %arg6: memref<64x96xbf16, #tpu.memory_space<vmem>>, %arg7: memref<32x96xbf16, #tpu.memory_space<vmem>>, %arg8: memref<64x96xbf16, #tpu.memory_space<vmem>>, %arg9: memref<32x192xbf16, #tpu.memory_space<vmem>>, %arg10: memref<640x1xf32, #tpu.memory_space<vmem>>, %arg11: memref<32x128xf32, #tpu.memory_space<vmem>>) attributes {dimension_semantics = [#tpu.dimension_semantics<parallel>], iteration_bounds = array<i64: 2>, scalar_prefetch = 0 : i64, scratch_operands = 0 : i64, tpu.core_type = #tpu.core_type<tc>, window_params = [{transform_indices = @transform_0, window_bounds = array<i64: 32, 128>}, {transform_indices = @transform_1, window_bounds = array<i64: 32, 128>}, {pipeline_mode = #tpu.pipeline_mode<synchronous>, transform_indices = @transform_2, window_bounds = array<i64: 96, 96>}, {pipeline_mode = #tpu.pipeline_mode<synchronous>, transform_indices = @transform_3, window_bounds = array<i64: 32, 96>}, {pipeline_mode = #tpu.pipeline_mode<synchronous>, transform_indices = @transform_4, window_bounds = array<i64: 32, 96>}, {pipeline_mode = #tpu.pipeline_mode<synchronous>, transform_indices = @transform_5, window_bounds = array<i64: 64, 96>}, {pipeline_mode = #tpu.pipeline_mode<synchronous>, transform_indices = @transform_6, window_bounds = array<i64: 32, 96>}, {pipeline_mode = #tpu.pipeline_mode<synchronous>, transform_indices = @transform_7, window_bounds = array<i64: 64, 96>}, {pipeline_mode = #tpu.pipeline_mode<synchronous>, transform_indices = @transform_8, window_bounds = array<i64: 32, 192>}, {pipeline_mode = #tpu.pipeline_mode<synchronous>, transform_indices = @transform_9, window_bounds = array<i64: 640, 1>}, {transform_indices = @transform_10, window_bounds = array<i64: 32, 128>}]} {
    %c0_i32 = arith.constant 0 : i32
    %c128_i32 = arith.constant 128 : i32
    %0 = arith.muli %c0_i32, %c128_i32 : i32
    %1 = tpu.assume_multiple %0, 128 : i32
    %c0 = arith.constant 0 : index
    %2 = arith.index_cast %1 : i32 to index
    %3 = vector.load %arg1[%c0, %2] : memref<32x128xf32, #tpu.memory_space<vmem>>, vector<32x128xf32>
    %c0_0 = arith.constant 0 : index
    %4 = arith.index_cast %1 : i32 to index
    %5 = vector.load %arg2[%c0_0, %4] : memref<32x128xf32, #tpu.memory_space<vmem>>, vector<32x128xf32>
    %6 = arith.truncf %3 : vector<32x128xf32> to vector<32x128xbf16>
    %7 = arith.extf %6 : vector<32x128xbf16> to vector<32x128xf32>
    %8 = arith.subf %3, %7 : vector<32x128xf32>
    %9 = tpu.concatenate %3, %3, %8 in 0 : vector<32x128xf32>, vector<32x128xf32>, vector<32x128xf32> -> vector<96x128xf32>
    %10 = arith.truncf %9 : vector<96x128xf32> to vector<96x128xbf16>
    %c0_1 = arith.constant 0 : index
    %c0_2 = arith.constant 0 : index
    %11 = vector.load %arg3[%c0_1, %c0_2] : memref<96x96xbf16, #tpu.memory_space<vmem>>, vector<96x96xbf16>
    %cst = arith.constant dense<0.000000e+00> : vector<96x128xf32>
    %12 = tpu.matmul %11, %10, %cst {dimension_numbers = #tpu.dot_dimension_numbers<[1], [0], [0], [1], [0, 0, 1, 1], [], []>} : vector<96x96xbf16>, vector<96x128xbf16>, vector<96x128xf32> -> vector<96x128xf32>
    %13 = vector.extract_strided_slice %12 {offsets = [0, 0], sizes = [32, 128], strides = [1, 1]} : vector<96x128xf32> to vector<32x128xf32>
    %14 = vector.extract_strided_slice %12 {offsets = [32, 0], sizes = [32, 128], strides = [1, 1]} : vector<96x128xf32> to vector<32x128xf32>
    %15 = vector.extract_strided_slice %12 {offsets = [64, 0], sizes = [32, 128], strides = [1, 1]} : vector<96x128xf32> to vector<32x128xf32>
    %16 = arith.mulf %13, %14 : vector<32x128xf32>
    %17 = vector.shape_cast %16 : vector<32x128xf32> to vector<4x8x128xf32>
    %18 = vector.shape_cast %15 : vector<32x128xf32> to vector<4x8x128xf32>
    %cst_3 = arith.constant dense<0xFF800000> : vector<4x128xf32>
    %19 = vector.multi_reduction <maximumf>, %17, %cst_3 [1] : vector<4x8x128xf32> to vector<4x128xf32>
    %20 = vector.shape_cast %19 : vector<4x128xf32> to vector<4x1x128xf32>
    %21 = vector.broadcast %20 : vector<4x1x128xf32> to vector<4x8x128xf32>
    %22 = arith.subf %17, %21 : vector<4x8x128xf32>
    %23 = math.exp %22 : vector<4x8x128xf32>
    %cst_4 = arith.constant dense<0.000000e+00> : vector<4x128xf32>
    %24 = vector.multi_reduction <add>, %23, %cst_4 [1] : vector<4x8x128xf32> to vector<4x128xf32>
    %25 = vector.shape_cast %24 : vector<4x128xf32> to vector<4x1x128xf32>
    %26 = tpu.reciprocal %25 {approx = true} : vector<4x1x128xf32> -> vector<4x1x128xf32>
    %27 = vector.broadcast %26 : vector<4x1x128xf32> to vector<4x8x128xf32>
    %28 = arith.mulf %23, %27 : vector<4x8x128xf32>
    %29 = arith.mulf %18, %28 : vector<4x8x128xf32>
    %30 = vector.shape_cast %29 : vector<4x8x128xf32> to vector<32x128xf32>
    %31 = arith.truncf %30 : vector<32x128xf32> to vector<32x128xbf16>
    %32 = arith.extf %31 : vector<32x128xbf16> to vector<32x128xf32>
    %33 = arith.subf %30, %32 : vector<32x128xf32>
    %34 = tpu.concatenate %30, %30, %33 in 0 : vector<32x128xf32>, vector<32x128xf32>, vector<32x128xf32> -> vector<96x128xf32>
    %35 = arith.truncf %34 : vector<96x128xf32> to vector<96x128xbf16>
    %c0_5 = arith.constant 0 : index
    %c0_6 = arith.constant 0 : index
    %36 = vector.load %arg4[%c0_5, %c0_6] : memref<32x96xbf16, #tpu.memory_space<vmem>>, vector<32x96xbf16>
    %cst_7 = arith.constant dense<0.000000e+00> : vector<32x128xf32>
    %37 = tpu.matmul %36, %35, %cst_7 {dimension_numbers = #tpu.dot_dimension_numbers<[1], [0], [0], [1], [0, 0, 1, 1], [], []>} : vector<32x96xbf16>, vector<96x128xbf16>, vector<32x128xf32> -> vector<32x128xf32>
    %c0_8 = arith.constant 0 : index
    %c0_9 = arith.constant 0 : index
    %38 = vector.load %arg10[%c0_8, %c0_9] : memref<640x1xf32, #tpu.memory_space<vmem>>, vector<32x1xf32>
    %39 = vector.broadcast %38 : vector<32x1xf32> to vector<32x128xf32>
    %40 = arith.addf %37, %39 : vector<32x128xf32>
    %41 = arith.addf %3, %40 : vector<32x128xf32>
    %c64 = arith.constant 64 : index
    %c0_10 = arith.constant 0 : index
    %42 = vector.load %arg10[%c64, %c0_10] : memref<640x1xf32, #tpu.memory_space<vmem>>, vector<32x1xf32>
    %c128 = arith.constant 128 : index
    %c0_11 = arith.constant 0 : index
    %43 = vector.load %arg10[%c128, %c0_11] : memref<640x1xf32, #tpu.memory_space<vmem>>, vector<32x1xf32>
    %cst_12 = arith.constant dense<0.000000e+00> : vector<128xf32>
    %44 = vector.multi_reduction <add>, %41, %cst_12 [0] : vector<32x128xf32> to vector<128xf32>
    %45 = vector.shape_cast %44 : vector<128xf32> to vector<1x128xf32>
    %cst_13 = arith.constant 3.200000e+01 : f32
    %46 = vector.broadcast %cst_13 : f32 to vector<1x128xf32>
    %47 = arith.divf %45, %46 : vector<1x128xf32>
    %48 = vector.broadcast %47 : vector<1x128xf32> to vector<32x128xf32>
    %49 = arith.subf %41, %48 : vector<32x128xf32>
    %50 = arith.mulf %49, %49 : vector<32x128xf32>
    %cst_14 = arith.constant dense<0.000000e+00> : vector<128xf32>
    %51 = vector.multi_reduction <add>, %50, %cst_14 [0] : vector<32x128xf32> to vector<128xf32>
    %52 = vector.shape_cast %51 : vector<128xf32> to vector<1x128xf32>
    %cst_15 = arith.constant 3.200000e+01 : f32
    %53 = vector.broadcast %cst_15 : f32 to vector<1x128xf32>
    %54 = arith.divf %52, %53 : vector<1x128xf32>
    %cst_16 = arith.constant 9.99999974E-6 : f32
    %55 = vector.broadcast %cst_16 : f32 to vector<1x128xf32>
    %56 = arith.addf %54, %55 : vector<1x128xf32>
    %57 = math.rsqrt %56 : vector<1x128xf32>
    %58 = vector.broadcast %57 : vector<1x128xf32> to vector<32x128xf32>
    %59 = arith.mulf %49, %58 : vector<32x128xf32>
    %60 = vector.broadcast %42 : vector<32x1xf32> to vector<32x128xf32>
    %61 = arith.mulf %59, %60 : vector<32x128xf32>
    %62 = vector.broadcast %43 : vector<32x1xf32> to vector<32x128xf32>
    %63 = arith.addf %61, %62 : vector<32x128xf32>
    %64 = arith.truncf %63 : vector<32x128xf32> to vector<32x128xbf16>
    %65 = arith.extf %64 : vector<32x128xbf16> to vector<32x128xf32>
    %66 = arith.subf %63, %65 : vector<32x128xf32>
    %67 = tpu.concatenate %63, %63, %66 in 0 : vector<32x128xf32>, vector<32x128xf32>, vector<32x128xf32> -> vector<96x128xf32>
    %68 = arith.truncf %67 : vector<96x128xf32> to vector<96x128xbf16>
    %c0_17 = arith.constant 0 : index
    %c0_18 = arith.constant 0 : index
    %69 = vector.load %arg5[%c0_17, %c0_18] : memref<32x96xbf16, #tpu.memory_space<vmem>>, vector<32x96xbf16>
    %cst_19 = arith.constant dense<0.000000e+00> : vector<32x128xf32>
    %70 = tpu.matmul %69, %68, %cst_19 {dimension_numbers = #tpu.dot_dimension_numbers<[1], [0], [0], [1], [0, 0, 1, 1], [], []>} : vector<32x96xbf16>, vector<96x128xbf16>, vector<32x128xf32> -> vector<32x128xf32>
    %71 = arith.truncf %5 : vector<32x128xf32> to vector<32x128xbf16>
    %72 = arith.extf %71 : vector<32x128xbf16> to vector<32x128xf32>
    %73 = arith.subf %5, %72 : vector<32x128xf32>
    %74 = tpu.concatenate %5, %5, %73 in 0 : vector<32x128xf32>, vector<32x128xf32>, vector<32x128xf32> -> vector<96x128xf32>
    %75 = arith.truncf %74 : vector<96x128xf32> to vector<96x128xbf16>
    %c0_20 = arith.constant 0 : index
    %c0_21 = arith.constant 0 : index
    %76 = vector.load %arg6[%c0_20, %c0_21] : memref<64x96xbf16, #tpu.memory_space<vmem>>, vector<64x96xbf16>
    %cst_22 = arith.constant dense<0.000000e+00> : vector<64x128xf32>
    %77 = tpu.matmul %76, %75, %cst_22 {dimension_numbers = #tpu.dot_dimension_numbers<[1], [0], [0], [1], [0, 0, 1, 1], [], []>} : vector<64x96xbf16>, vector<96x128xbf16>, vector<64x128xf32> -> vector<64x128xf32>
    %78 = vector.extract_strided_slice %77 {offsets = [0, 0], sizes = [32, 128], strides = [1, 1]} : vector<64x128xf32> to vector<32x128xf32>
    %79 = vector.extract_strided_slice %77 {offsets = [32, 0], sizes = [32, 128], strides = [1, 1]} : vector<64x128xf32> to vector<32x128xf32>
    %80 = arith.mulf %70, %78 : vector<32x128xf32>
    %81 = vector.shape_cast %80 : vector<32x128xf32> to vector<4x8x128xf32>
    %82 = vector.shape_cast %79 : vector<32x128xf32> to vector<4x8x128xf32>
    %cst_23 = arith.constant dense<0xFF800000> : vector<4x128xf32>
    %83 = vector.multi_reduction <maximumf>, %81, %cst_23 [1] : vector<4x8x128xf32> to vector<4x128xf32>
    %84 = vector.shape_cast %83 : vector<4x128xf32> to vector<4x1x128xf32>
    %85 = vector.broadcast %84 : vector<4x1x128xf32> to vector<4x8x128xf32>
    %86 = arith.subf %81, %85 : vector<4x8x128xf32>
    %87 = math.exp %86 : vector<4x8x128xf32>
    %cst_24 = arith.constant dense<0.000000e+00> : vector<4x128xf32>
    %88 = vector.multi_reduction <add>, %87, %cst_24 [1] : vector<4x8x128xf32> to vector<4x128xf32>
    %89 = vector.shape_cast %88 : vector<4x128xf32> to vector<4x1x128xf32>
    %90 = tpu.reciprocal %89 {approx = true} : vector<4x1x128xf32> -> vector<4x1x128xf32>
    %91 = vector.broadcast %90 : vector<4x1x128xf32> to vector<4x8x128xf32>
    %92 = arith.mulf %87, %91 : vector<4x8x128xf32>
    %93 = arith.mulf %82, %92 : vector<4x8x128xf32>
    %94 = vector.shape_cast %93 : vector<4x8x128xf32> to vector<32x128xf32>
    %95 = arith.truncf %94 : vector<32x128xf32> to vector<32x128xbf16>
    %96 = arith.extf %95 : vector<32x128xbf16> to vector<32x128xf32>
    %97 = arith.subf %94, %96 : vector<32x128xf32>
    %98 = tpu.concatenate %94, %94, %97 in 0 : vector<32x128xf32>, vector<32x128xf32>, vector<32x128xf32> -> vector<96x128xf32>
    %99 = arith.truncf %98 : vector<96x128xf32> to vector<96x128xbf16>
    %c0_25 = arith.constant 0 : index
    %c0_26 = arith.constant 0 : index
    %100 = vector.load %arg7[%c0_25, %c0_26] : memref<32x96xbf16, #tpu.memory_space<vmem>>, vector<32x96xbf16>
    %cst_27 = arith.constant dense<0.000000e+00> : vector<32x128xf32>
    %101 = tpu.matmul %100, %99, %cst_27 {dimension_numbers = #tpu.dot_dimension_numbers<[1], [0], [0], [1], [0, 0, 1, 1], [], []>} : vector<32x96xbf16>, vector<96x128xbf16>, vector<32x128xf32> -> vector<32x128xf32>
    %c192 = arith.constant 192 : index
    %c0_28 = arith.constant 0 : index
    %102 = vector.load %arg10[%c192, %c0_28] : memref<640x1xf32, #tpu.memory_space<vmem>>, vector<32x1xf32>
    %103 = vector.broadcast %102 : vector<32x1xf32> to vector<32x128xf32>
    %104 = arith.addf %101, %103 : vector<32x128xf32>
    %105 = arith.addf %63, %104 : vector<32x128xf32>
    %c256 = arith.constant 256 : index
    %c0_29 = arith.constant 0 : index
    %106 = vector.load %arg10[%c256, %c0_29] : memref<640x1xf32, #tpu.memory_space<vmem>>, vector<32x1xf32>
    %c320 = arith.constant 320 : index
    %c0_30 = arith.constant 0 : index
    %107 = vector.load %arg10[%c320, %c0_30] : memref<640x1xf32, #tpu.memory_space<vmem>>, vector<32x1xf32>
    %cst_31 = arith.constant dense<0.000000e+00> : vector<128xf32>
    %108 = vector.multi_reduction <add>, %105, %cst_31 [0] : vector<32x128xf32> to vector<128xf32>
    %109 = vector.shape_cast %108 : vector<128xf32> to vector<1x128xf32>
    %cst_32 = arith.constant 3.200000e+01 : f32
    %110 = vector.broadcast %cst_32 : f32 to vector<1x128xf32>
    %111 = arith.divf %109, %110 : vector<1x128xf32>
    %112 = vector.broadcast %111 : vector<1x128xf32> to vector<32x128xf32>
    %113 = arith.subf %105, %112 : vector<32x128xf32>
    %114 = arith.mulf %113, %113 : vector<32x128xf32>
    %cst_33 = arith.constant dense<0.000000e+00> : vector<128xf32>
    %115 = vector.multi_reduction <add>, %114, %cst_33 [0] : vector<32x128xf32> to vector<128xf32>
    %116 = vector.shape_cast %115 : vector<128xf32> to vector<1x128xf32>
    %cst_34 = arith.constant 3.200000e+01 : f32
    %117 = vector.broadcast %cst_34 : f32 to vector<1x128xf32>
    %118 = arith.divf %116, %117 : vector<1x128xf32>
    %cst_35 = arith.constant 9.99999974E-6 : f32
    %119 = vector.broadcast %cst_35 : f32 to vector<1x128xf32>
    %120 = arith.addf %118, %119 : vector<1x128xf32>
    %121 = math.rsqrt %120 : vector<1x128xf32>
    %122 = vector.broadcast %121 : vector<1x128xf32> to vector<32x128xf32>
    %123 = arith.mulf %113, %122 : vector<32x128xf32>
    %124 = vector.broadcast %106 : vector<32x1xf32> to vector<32x128xf32>
    %125 = arith.mulf %123, %124 : vector<32x128xf32>
    %126 = vector.broadcast %107 : vector<32x1xf32> to vector<32x128xf32>
    %127 = arith.addf %125, %126 : vector<32x128xf32>
    %128 = arith.truncf %127 : vector<32x128xf32> to vector<32x128xbf16>
    %129 = arith.extf %128 : vector<32x128xbf16> to vector<32x128xf32>
    %130 = arith.subf %127, %129 : vector<32x128xf32>
    %131 = tpu.concatenate %127, %127, %130 in 0 : vector<32x128xf32>, vector<32x128xf32>, vector<32x128xf32> -> vector<96x128xf32>
    %132 = arith.truncf %131 : vector<96x128xf32> to vector<96x128xbf16>
    %c0_36 = arith.constant 0 : index
    %c0_37 = arith.constant 0 : index
    %133 = vector.load %arg8[%c0_36, %c0_37] : memref<64x96xbf16, #tpu.memory_space<vmem>>, vector<64x96xbf16>
    %cst_38 = arith.constant dense<0.000000e+00> : vector<64x128xf32>
    %134 = tpu.matmul %133, %132, %cst_38 {dimension_numbers = #tpu.dot_dimension_numbers<[1], [0], [0], [1], [0, 0, 1, 1], [], []>} : vector<64x96xbf16>, vector<96x128xbf16>, vector<64x128xf32> -> vector<64x128xf32>
    %c384 = arith.constant 384 : index
    %c0_39 = arith.constant 0 : index
    %135 = vector.load %arg10[%c384, %c0_39] : memref<640x1xf32, #tpu.memory_space<vmem>>, vector<64x1xf32>
    %136 = vector.broadcast %135 : vector<64x1xf32> to vector<64x128xf32>
    %137 = arith.addf %134, %136 : vector<64x128xf32>
    %cst_40 = arith.constant 0.000000e+00 : f32
    %138 = vector.broadcast %cst_40 : f32 to vector<64x128xf32>
    %139 = arith.maximumf %137, %138 : vector<64x128xf32>
    %140 = arith.truncf %139 : vector<64x128xf32> to vector<64x128xbf16>
    %141 = arith.extf %140 : vector<64x128xbf16> to vector<64x128xf32>
    %142 = arith.subf %139, %141 : vector<64x128xf32>
    %143 = tpu.concatenate %139, %139, %142 in 0 : vector<64x128xf32>, vector<64x128xf32>, vector<64x128xf32> -> vector<192x128xf32>
    %144 = arith.truncf %143 : vector<192x128xf32> to vector<192x128xbf16>
    %c0_41 = arith.constant 0 : index
    %c0_42 = arith.constant 0 : index
    %145 = vector.load %arg9[%c0_41, %c0_42] : memref<32x192xbf16, #tpu.memory_space<vmem>>, vector<32x192xbf16>
    %cst_43 = arith.constant dense<0.000000e+00> : vector<32x128xf32>
    %146 = tpu.matmul %145, %144, %cst_43 {dimension_numbers = #tpu.dot_dimension_numbers<[1], [0], [0], [1], [0, 0, 1, 1], [], []>} : vector<32x192xbf16>, vector<192x128xbf16>, vector<32x128xf32> -> vector<32x128xf32>
    %c448 = arith.constant 448 : index
    %c0_44 = arith.constant 0 : index
    %147 = vector.load %arg10[%c448, %c0_44] : memref<640x1xf32, #tpu.memory_space<vmem>>, vector<32x1xf32>
    %148 = vector.broadcast %147 : vector<32x1xf32> to vector<32x128xf32>
    %149 = arith.addf %146, %148 : vector<32x128xf32>
    %150 = arith.addf %127, %149 : vector<32x128xf32>
    %c512 = arith.constant 512 : index
    %c0_45 = arith.constant 0 : index
    %151 = vector.load %arg10[%c512, %c0_45] : memref<640x1xf32, #tpu.memory_space<vmem>>, vector<32x1xf32>
    %c576 = arith.constant 576 : index
    %c0_46 = arith.constant 0 : index
    %152 = vector.load %arg10[%c576, %c0_46] : memref<640x1xf32, #tpu.memory_space<vmem>>, vector<32x1xf32>
    %cst_47 = arith.constant dense<0.000000e+00> : vector<128xf32>
    %153 = vector.multi_reduction <add>, %150, %cst_47 [0] : vector<32x128xf32> to vector<128xf32>
    %154 = vector.shape_cast %153 : vector<128xf32> to vector<1x128xf32>
    %cst_48 = arith.constant 3.200000e+01 : f32
    %155 = vector.broadcast %cst_48 : f32 to vector<1x128xf32>
    %156 = arith.divf %154, %155 : vector<1x128xf32>
    %157 = vector.broadcast %156 : vector<1x128xf32> to vector<32x128xf32>
    %158 = arith.subf %150, %157 : vector<32x128xf32>
    %159 = arith.mulf %158, %158 : vector<32x128xf32>
    %cst_49 = arith.constant dense<0.000000e+00> : vector<128xf32>
    %160 = vector.multi_reduction <add>, %159, %cst_49 [0] : vector<32x128xf32> to vector<128xf32>
    %161 = vector.shape_cast %160 : vector<128xf32> to vector<1x128xf32>
    %cst_50 = arith.constant 3.200000e+01 : f32
    %162 = vector.broadcast %cst_50 : f32 to vector<1x128xf32>
    %163 = arith.divf %161, %162 : vector<1x128xf32>
    %cst_51 = arith.constant 9.99999974E-6 : f32
    %164 = vector.broadcast %cst_51 : f32 to vector<1x128xf32>
    %165 = arith.addf %163, %164 : vector<1x128xf32>
    %166 = math.rsqrt %165 : vector<1x128xf32>
    %167 = vector.broadcast %166 : vector<1x128xf32> to vector<32x128xf32>
    %168 = arith.mulf %158, %167 : vector<32x128xf32>
    %169 = vector.broadcast %151 : vector<32x1xf32> to vector<32x128xf32>
    %170 = arith.mulf %168, %169 : vector<32x128xf32>
    %171 = vector.broadcast %152 : vector<32x1xf32> to vector<32x128xf32>
    %172 = arith.addf %170, %171 : vector<32x128xf32>
    %c0_52 = arith.constant 0 : index
    %173 = arith.index_cast %1 : i32 to index
    %174 = vector.load %arg11[%c0_52, %173] : memref<32x128xf32, #tpu.memory_space<vmem>>, vector<32x128xf32>
    tpu.vector_store %arg11[%c0_52, %173], %172 {strides = array<i32>} : memref<32x128xf32, #tpu.memory_space<vmem>>, vector<32x128xf32>,
    %c1_i32 = arith.constant 1 : i32
    return
  }
  func.func @transform_0(%arg0: i32) -> (i32, i32) {
    %c0_i32 = arith.constant 0 : i32
    %c0_i32_0 = arith.constant 0 : i32
    return %c0_i32, %arg0 : i32, i32
  }
  func.func @transform_1(%arg0: i32) -> (i32, i32) {
    %c0_i32 = arith.constant 0 : i32
    %c0_i32_0 = arith.constant 0 : i32
    return %c0_i32, %arg0 : i32, i32
  }
  func.func @transform_2(%arg0: i32) -> (i32, i32) {
    %c0_i32 = arith.constant 0 : i32
    %c0_i32_0 = arith.constant 0 : i32
    %c0_i32_1 = arith.constant 0 : i32
    return %c0_i32, %c0_i32_0 : i32, i32
  }
  func.func @transform_3(%arg0: i32) -> (i32, i32) {
    %c0_i32 = arith.constant 0 : i32
    %c0_i32_0 = arith.constant 0 : i32
    %c0_i32_1 = arith.constant 0 : i32
    return %c0_i32, %c0_i32_0 : i32, i32
  }
  func.func @transform_4(%arg0: i32) -> (i32, i32) {
    %c0_i32 = arith.constant 0 : i32
    %c0_i32_0 = arith.constant 0 : i32
    %c0_i32_1 = arith.constant 0 : i32
    return %c0_i32, %c0_i32_0 : i32, i32
  }
  func.func @transform_5(%arg0: i32) -> (i32, i32) {
    %c0_i32 = arith.constant 0 : i32
    %c0_i32_0 = arith.constant 0 : i32
    %c0_i32_1 = arith.constant 0 : i32
    return %c0_i32, %c0_i32_0 : i32, i32
  }
  func.func @transform_6(%arg0: i32) -> (i32, i32) {
    %c0_i32 = arith.constant 0 : i32
    %c0_i32_0 = arith.constant 0 : i32
    %c0_i32_1 = arith.constant 0 : i32
    return %c0_i32, %c0_i32_0 : i32, i32
  }
  func.func @transform_7(%arg0: i32) -> (i32, i32) {
    %c0_i32 = arith.constant 0 : i32
    %c0_i32_0 = arith.constant 0 : i32
    %c0_i32_1 = arith.constant 0 : i32
    return %c0_i32, %c0_i32_0 : i32, i32
  }
  func.func @transform_8(%arg0: i32) -> (i32, i32) {
    %c0_i32 = arith.constant 0 : i32
    %c0_i32_0 = arith.constant 0 : i32
    %c0_i32_1 = arith.constant 0 : i32
    return %c0_i32, %c0_i32_0 : i32, i32
  }
  func.func @transform_9(%arg0: i32) -> (i32, i32) {
    %c0_i32 = arith.constant 0 : i32
    %c0_i32_0 = arith.constant 0 : i32
    %c0_i32_1 = arith.constant 0 : i32
    return %c0_i32, %c0_i32_0 : i32, i32
  }
  func.func @transform_10(%arg0: i32) -> (i32, i32) {
    %c0_i32 = arith.constant 0 : i32
    %c0_i32_0 = arith.constant 0 : i32
    return %c0_i32, %arg0 : i32, i32
  }
}

</mosaic_0001>

<bundles_post_ra>
// kernel: decoder_layer_pallas_cf.1
= control target key start
LH: loop header
LB: loop body
LE: loop exit
PB: predicated region body
PF: predicated region fallthrough
CT: control target
= control target key end

     0   :  { %s2303_s13 = smov 0   ;;  %s2305_s14 = smov 0   ;;  %s2705_s0 = inlined_call_operand.vmem [shape: f32[32,256], index: 0, kind: input, shape index: {}]   ;;  %s2706_s1 = inlined_call_operand.vmem [shape: f32[32,256], index: 1, kind: input, shape index: {}]   ;;  %s2707_s2 = inlined_call_operand.vmem [shape: bf16[96,96], index: 2, kind: input, shape index: {}]   ;;  %s2708_s3 = inlined_call_operand.vmem [shape: bf16[32,96], index: 3, kind: input, shape index: {}]   ;;  %s2709_s4 = inlined_call_operand.vmem [shape: bf16[32,96], index: 4, kind: input, shape index: {}]   ;;  %s2710_s5 = inlined_call_operand.vmem [shape: bf16[64,96], index: 5, kind: input, shape index: {}]   ;;  %s2711_s6 = inlined_call_operand.vmem [shape: bf16[32,96], index: 6, kind: input, shape index: {}]   ;;  %s2712_s7 = inlined_call_operand.vmem [shape: bf16[64,96], index: 7, kind: input, shape index: {}]   ;;  %s2713_s8 = inlined_call_operand.vmem [shape: bf16[32,192], index: 8, kind: input, shape index: {}]   ;;  %s2714_s9 = inlined_call_operand.vmem [shape: f32[640,1], index: 9, kind: input, shape index: {}]   ;;  %s2715_s10 = inlined_call_operand.vmem [shape: f32[32,256], index: 10, kind: output, shape index: {}]  }
   0x1   :  { %s2307_s15 = smov 0  }
   0x2 LB: > { %s1902_s16 = sadd.s32 4294967295, %s2245_s15   ;;  %s2320_s17 = sadd.s32 1, %s2245_s15   ;;  %s2245_s15 = sphi %s2307_s15, %s2720_s15   ;;  %s2241_s14 = sphi %s2305_s14, %s2719_s14   ;;  %s2237_s13 = sphi %s2303_s13, %s2718_s13  }
   0x3   : > { %s24_s18 = ssub.s32 %s2245_s15, %s2320_s17  ;;  %s27_s19 = sadd.s32 1, %s2241_s14 }
   0x4   : > { %p25_p0 = scmp.eq.s32.totalorder %s24_s18, 0  ;;  %p34_p1 = scmp.ne.s32.totalorder %s2241_s14, %s2237_s13 }
   0x5   : > { %p35_p2 = scmp.eq.s32.totalorder %s2245_s15, 0  ;;  %p258_p3 = scmp.eq.s32.totalorder %s1902_s16, 1 }
   0x6   : > { %s2331_s20 = scalar_select %p25_p0, %s2241_s14, %s27_s19  }
   0x7   : > { %p2333_p4 = por %p35_p2, %p34_p1  ;;  %p2337_p5 = por %p258_p3, %p34_p1 }
   0x8   : > { %p1905_p6 = scmp.ge.s32.totalorder %s2245_s15, 2 }
   0xa   : > { %304 = sbr.rel (%p1905_p6) target bundleno = 31 (0x1f), region = 48 }
  0x11   : > { %307 = sbr.rel (!%p2333_p4) target bundleno = 24 (0x18), region = 52  ;;  %s309_s23 = sand.u32 (%p2333_p4), 1, %s2241_s14  }
  0x12   : > { %s1907_s24 = sshll.u32 (%p2333_p4), %s2245_s15, 3  ;;  %s1906_s25 = sshll.u32 (%p2333_p4), %s309_s23, 5 }
  0x13   : > { %s313_s28 = scalar_lea.vmem (%p2333_p4), %s2705_s0, %s1907_s24  ;;  %s311_s29 = scalar_lea.vmem (%p2333_p4), [#allocation2], %s1906_s25 }
  0x14   : > { %v347_v0 = vld [vmem:[%s313_s28] sm:$0xff] (%p2333_p4)  ;;  %v349_v1 = vld [vmem:[%s313_s28 + $0x10] sm:$0xff] (%p2333_p4) }
  0x15   : > { %v351_v2 = vld [vmem:[%s313_s28 + $0x20] sm:$0xff] (%p2333_p4)  ;;  %348 = vst [vmem:[%s311_s29] sm:$0xff] (%p2333_p4), %v347_v0  ;;  %350 = vst [vmem:[%s311_s29 + $0x8] sm:$0xff] (%p2333_p4), %v349_v1  ;;  %v353_v3 = vld [vmem:[%s313_s28 + $0x30] sm:$0xff] (%p2333_p4) }
  0x16   : > { %352 = vst [vmem:[%s311_s29 + $0x10] sm:$0xff] (%p2333_p4), %v351_v2  ;;  %354 = vst [vmem:[%s311_s29 + $0x18] sm:$0xff] (%p2333_p4), %v353_v3 }
  0x18 PF: > { %360 = sbr.rel (!%p2333_p4) target bundleno = 31 (0x1f), region = 90  ;;  %s362_s30 = sand.u32 (%p2333_p4), 1, %s2241_s14  }
  0x19   : > { %s1909_s11 = sshll.u32 (%p2333_p4), %s2245_s15, 3  ;;  %s1908_s12 = sshll.u32 (%p2333_p4), %s362_s30, 5 }
  0x1a   : > { %s366_s23 = scalar_lea.vmem (%p2333_p4), %s2706_s1, %s1909_s11  ;;  %s364_s24 = scalar_lea.vmem (%p2333_p4), [#allocation3], %s1908_s12 }
  0x1b   : > { %v400_v4 = vld [vmem:[%s366_s23] sm:$0xff] (%p2333_p4)  ;;  %v402_v5 = vld [vmem:[%s366_s23 + $0x10] sm:$0xff] (%p2333_p4) }
  0x1c   : > { %v404_v6 = vld [vmem:[%s366_s23 + $0x20] sm:$0xff] (%p2333_p4)  ;;  %401 = vst [vmem:[%s364_s24] sm:$0xff] (%p2333_p4), %v400_v4  ;;  %403 = vst [vmem:[%s364_s24 + $0x8] sm:$0xff] (%p2333_p4), %v402_v5  ;;  %v406_v7 = vld [vmem:[%s366_s23 + $0x30] sm:$0xff] (%p2333_p4) }
  0x1d   : > { %405 = vst [vmem:[%s364_s24 + $0x10] sm:$0xff] (%p2333_p4), %v404_v6  ;;  %407 = vst [vmem:[%s364_s24 + $0x18] sm:$0xff] (%p2333_p4), %v406_v7 }
  0x1f PF: > { %p1910_p7 = scmp.ge.s32.totalorder %s2245_s15, 1  ;;  %p412_p8 = scmp.lt.s32.totalorder %s2245_s15, 3 }
  0x21   : > { %p413_p9 = pnand %p1910_p7, %p412_p8 }
  0x22   : > { %s419_s21 = sand.u32 (!%p413_p9), 1, %s2237_s13   ;;  %v2159_v8 = vld [vmem:[%s2707_s2] sm:$0xff] (!%p413_p9)   ;;  %vm529_vm0 = vcmask (!%p413_p9), 785408   ;;  %v2160_v25 = vld [vmem:[%s2707_s2 + $0x8] sm:$0xff] (!%p413_p9)   ;;  %v2161_v26 = vld [vmem:[%s2707_s2 + $0x10] sm:$0xff] (!%p413_p9)   ;;  %v2247_v32 = vmov (!%p413_p9), 0  }
  0x23   : > { %416 = sbr.rel (%p413_p9) target bundleno = 1845 (0x735), region = 128  ;;  %s2362_s27 = sshll.u32 (!%p413_p9), %s419_s21, 5  ;;  %2032 = vmatprep.mubr.msk.bf16.mxu1 (!%p413_p9), %vm529_vm0, %v2159_v8  ;;  %v2162_v27 = vld [vmem:[%s2707_s2 + $0x18] sm:$0xff] (!%p413_p9)   ;;  %v2163_v28 = vld [vmem:[%s2707_s2 + $0x20] sm:$0xff] (!%p413_p9)   ;;  %v2164_v29 = vld [vmem:[%s2707_s2 + $0x28] sm:$0xff] (!%p413_p9)   ;;  %2157 = vset.pattern.permute.xlu0 (!%p413_p9), %v2247_v32  ;;  %vm1621_vm1 = vcmask (!%p413_p9), 523264  }
  0x24   : > { %s421_s28 = scalar_lea.vmem (!%p413_p9), [#allocation2], %s2362_s27  ;;  %v2165_v30 = vld [vmem:[%s2708_s3] sm:$0xff] (!%p413_p9)   ;;  %2158 = vset.pattern.permute.xlu1 (!%p413_p9), %v2247_v32  ;;  %v723_v33 = vld [vmem:[%s2714_s9 + $0x10] sm:$0xff] (!%p413_p9)  ;;  %v722_v34 = vld [vmem:[%s2714_s9 + $0x8] sm:$0xff] (!%p413_p9)  ;;  %s428_s26 = scalar_lea.vmem (!%p413_p9), [#allocation3], %s2362_s27 }
  0x25   : > { %v2366_v9 = vld [vmem:[%s421_s28] sm:$0xff] (!%p413_p9)  ;;  %v2368_v10 = vld [vmem:[%s421_s28 + $0x8] sm:$0xff] (!%p413_p9)  ;;  %v2370_v11 = vld [vmem:[%s421_s28 + $0x10] sm:$0xff] (!%p413_p9)  ;;  %737 = vperm.xlu1 (!%p413_p9), %2158, %v723_v33   ;;  %s465_s18 = scalar_lea.vmem (!%p413_p9), [#allocation4], %s2362_s27 }
  0x26   : > { %v475_v12 = vpack.c.bf16 (!%p413_p9), %v2368_v10, %v2366_v9  ;;  %v2374_v13 = vld [vmem:[%s421_s28 + $0x18] sm:$0xff] (!%p413_p9)  ;;  %v721_v31 = vld [vmem:[%s2714_s9] sm:$0xff] (!%p413_p9)  ;;  %v815_v37 = vld [vmem:[%s2714_s9 + $0x48] sm:$0xff] (!%p413_p9) }
  0x27   : > { %v476_v14 = vpack.c.bf16 (!%p413_p9), %v2374_v13, %v2370_v11  ;;  %727 = vperm.xlu0 (!%p413_p9), %2157, %v721_v31   ;;  %v724_v35 = vld [vmem:[%s2714_s9 + $0x18] sm:$0xff] (!%p413_p9)  ;;  %v814_v36 = vld [vmem:[%s2714_s9 + $0x40] sm:$0xff] (!%p413_p9)  ;;  %v819_v39 = vld [vmem:[%s2714_s9 + $0x88] sm:$0xff] (!%p413_p9) }
  0x28   : > { %2020 = vmatprep.subr.bf16.mxu1 (!%p413_p9), %v475_v12  ;;  %v477_v15 = vunpack.c.l.bf16 (!%p413_p9), %v475_v12  ;;  %v478_v16 = vunpack.c.h.bf16 (!%p413_p9), %v475_v12  ;;  %v818_v38 = vld [vmem:[%s2714_s9 + $0x80] sm:$0xff] (!%p413_p9)  ;;  %v816_v40 = vld [vmem:[%s2714_s9 + $0x50] sm:$0xff] (!%p413_p9)  ;;  %v817_v41 = vld [vmem:[%s2714_s9 + $0x58] sm:$0xff] (!%p413_p9) }
  0x29   : > { %2021 = vmatpush3.bf16.msra.mxu1 (!%p413_p9), %v475_v12  ;;  %v479_v19 = vunpack.c.l.bf16 (!%p413_p9), %v476_v14  ;;  %v480_v20 = vunpack.c.h.bf16 (!%p413_p9), %v476_v14  ;;  %742 = vperm.xlu1 (!%p413_p9), %2158, %v724_v35   ;;  %v820_v42 = vld [vmem:[%s2714_s9 + $0x90] sm:$0xff] (!%p413_p9)  ;;  %v821_v43 = vld [vmem:[%s2714_s9 + $0x98] sm:$0xff] (!%p413_p9)  ;;  %v1195_v44 = vld [vmem:[%s2714_s9 + $0xc0] sm:$0xff] (!%p413_p9) }
  0x2a   : > { %2022 = vmatprep.subr.bf16.mxu1 %v476_v14  ;;  %v481_v17 = vsub.f32 %v2366_v9, %v477_v15  ;;  %v482_v18 = vsub.f32 %v2368_v10, %v478_v16  ;;  %v1196_v45 = vld [vmem:[%s2714_s9 + $0xc8] sm:$0xff]  ;;  %v1197_v46 = vld [vmem:[%s2714_s9 + $0xd0] sm:$0xff]  ;;  %v1198_v47 = vld [vmem:[%s2714_s9 + $0xd8] sm:$0xff]  ;;  %s1961_s19 = sshll.u32 (%p2337_p5), %s1902_s16, 3 }
  0x2b   : > { %v483_v22 = vsub.f32 %v2370_v11, %v479_v19  ;;  %v484_v23 = vsub.f32 %v2374_v13, %v480_v20  ;;  %732 = vperm.xlu0 %2157, %v722_v34   ;;  %v1288_v48 = vld [vmem:[%s2714_s9 + $0x100] sm:$0xff]  ;;  %v1289_v49 = vld [vmem:[%s2714_s9 + $0x108] sm:$0xff]  ;;  %v1290_v55 = vld [vmem:[%s2714_s9 + $0x110] sm:$0xff]  ;;  %s1783_s21 = scalar_lea.vmem (%p2337_p5), %s2715_s10, %s1961_s19 }
  0x2c   : > { %v485_v21 = vpack.c.bf16 %v482_v18, %v481_v17  ;;  %v1292_v50 = vld [vmem:[%s2714_s9 + $0x140] sm:$0xff]  ;;  %v1293_v52 = vld [vmem:[%s2714_s9 + $0x148] sm:$0xff]  ;;  %v1291_v57 = vld [vmem:[%s2714_s9 + $0x118] sm:$0xff] }
  0x2d   : > { %2023 = vmatpush3.bf16.msra.mxu1 %v476_v14  ;;  %v486_v24 = vpack.c.bf16 %v484_v23, %v483_v22  ;;  %864 = vperm.xlu1 %2158, %v815_v37   ;;  %v1294_v58 = vld [vmem:[%s2714_s9 + $0x150] sm:$0xff]  ;;  %v1295_v60 = vld [vmem:[%s2714_s9 + $0x158] sm:$0xff]  ;;  %v1398_v1 = vld [vmem:[%s2714_s9 + $0x180] sm:$0xff] }
  0x2e   : > { %2024 = vmatprep.subr.bf16.mxu1 %v475_v12  ;;  %v1399_v7 = vld [vmem:[%s2714_s9 + $0x188] sm:$0xff]  ;;  %v1400_v16 = vld [vmem:[%s2714_s9 + $0x190] sm:$0xff]  ;;  %v1401_v22 = vld [vmem:[%s2714_s9 + $0x198] sm:$0xff] }
  0x2f   : > { %859 = vperm.xlu0 %2157, %v814_v36   ;;  %v1403_v36 = vld [vmem:[%s2714_s9 + $0x1a8] sm:$0xff] }
  0x31   : > { %2025 = vmatpush3.bf16.msra.mxu1 %v475_v12  ;;  %888 = vperm.xlu1 %2158, %v819_v39  }
  0x32   : > { %2026 = vmatprep.subr.bf16.mxu1 %v476_v14 }
  0x33   : > { %883 = vperm.xlu0 %2157, %v818_v38  }
  0x35   : > { %2027 = vmatpush3.bf16.msra.mxu1 %v476_v14  ;;  %874 = vperm.xlu1 %2158, %v817_v41   ;;  %v1404_v41 = vld [vmem:[%s2714_s9 + $0x1b0] sm:$0xff] }
  0x36   : > { %2028 = vmatprep.subr.bf16.mxu1 %v485_v21 }
  0x37   : > { %869 = vperm.xlu0 %2157, %v816_v40  }
  0x39   : > { %2029 = vmatpush3.bf16.msra.mxu1 %v485_v21  ;;  %898 = vperm.xlu1 %2158, %v821_v43  }
  0x3a   : > { %2030 = vmatprep.subr.bf16.mxu1 %v486_v24 }
  0x3b   : > { %893 = vperm.xlu0 %2157, %v820_v42  }
  0x3d   : > { %2031 = vmatpush3.bf16.msra.mxu1 %v486_v24  ;;  %1206 = vperm.xlu1 %2158, %v1196_v45  }
  0x3f   : > { %1201 = vperm.xlu0 %2157, %v1195_v44  }
  0x40   : > { %2033 = vmatmul.mubr.msk.bf16.vlgmr.msra.gmra.mrb[0].mxu1 %vm529_vm0, %v2160_v25 }
  0x41   : > { %2036 = vmatprep.mubr.msk.bf16.mxu1 %vm529_vm0, %v2161_v26  ;;  %1216 = vperm.xlu1 %2158, %v1198_v47  }
  0x43   : > { %1211 = vperm.xlu0 %2157, %v1197_v46   ;;  %v1405_v46 = vld [vmem:[%s2714_s9 + $0x1b8] sm:$0xff] }
  0x45   : > { %1337 = vperm.xlu1 %2158, %v1289_v49  }
  0x47   : > { %1332 = vperm.xlu0 %2157, %v1288_v48  }
  0x48   : > { %2037 = vmatmul.mubr.msk.bf16.gmra.mrb[4].mxu1 %vm529_vm0, %v2162_v27 }
  0x49   : > { %2040 = vmatprep.mubr.msk.bf16.mxu1 %vm529_vm0, %v2163_v28  ;;  %1361 = vperm.xlu1 %2158, %v1293_v52  }
  0x4b   : > { %1356 = vperm.xlu0 %2157, %v1292_v50  }
  0x4d   : > { %1347 = vperm.xlu1 %2158, %v1291_v57   ;;  %v1681_v57 = vld [vmem:[%s2714_s9 + $0x200] sm:$0xff] }
  0x4f   : > { %1342 = vperm.xlu0 %2157, %v1290_v55   ;;  %v1581_v55 = vld [vmem:[%s2714_s9 + $0x1d0] sm:$0xff] }
  0x50   : > { %2041 = vmatmul.mubr.msk.bf16.gmra.mrb[8].mxu1 %vm529_vm0, %v2164_v29  ;;  %v1402_v29 = vld [vmem:[%s2714_s9 + $0x1a0] sm:$0xff] }
  0x51   : > { %2056 = vmatprep.mubr.msk.bf16.mxu1 %vm529_vm0, %v2165_v30  ;;  %1371 = vperm.xlu1 %2158, %v1295_v60  }
  0x53   : > { %1366 = vperm.xlu0 %2157, %v1294_v58   ;;  %v1682_v58 = vld [vmem:[%s2714_s9 + $0x208] sm:$0xff] }
  0x55   : > { %1413 = vperm.xlu1 %2158, %v1399_v7  }
  0x57   : > { %1408 = vperm.xlu0 %2157, %v1398_v1  }
  0x59   : > { %1423 = vperm.xlu1 %2158, %v1401_v22  }
  0x5b   : > { %1418 = vperm.xlu0 %2157, %v1400_v16  }
  0x5d   : > { %1433 = vperm.xlu1 %2158, %v1403_v36  }
  0x5f   : > { %1428 = vperm.xlu0 %2157, %v1402_v29  }
  0x61   : > { %1443 = vperm.xlu1 %2158, %v1405_v46  }
  0x63   : > { %1438 = vperm.xlu0 %2157, %v1404_v41  }
 0x113   : > { %v2034_v51 = vpop.f32.mrb[0].mxu1 }
 0x114   : > { %v582_v53 = vpop.f32.mrb[1].mxu1 }
 0x115   : > { %v2035_v54 = vpop.f32.mrb[2].mxu1 }
 0x116   : > { %v585_v56 = vpop.f32.mrb[3].mxu1 }
 0x11b   : > { %v2038_v59 = vpop.f32.mrb[4].mxu1 }
 0x11c   : > { %v631_v61 = vmul.f32 %v2038_v59, %v2034_v51  ;;  %v598_v62 = vpop.f32.mrb[5].mxu1  ;;  %v1579_v51 = vld [vmem:[%s2714_s9 + $0x1c0] sm:$0xff] }
 0x11d   : > { %v629_v63 = vmul.f32 %v598_v62, %v582_v53  ;;  %v2039_v0 = vpop.f32.mrb[6].mxu1  ;;  %1585 = vperm.xlu0 %2157, %v1579_v51   ;;  %v1683_v62 = vld [vmem:[%s2714_s9 + $0x210] sm:$0xff] }
 0x11e   : > { %v645_v2 = vrot.slane %v631_v61, 4  ;;  %v632_v3 = vmul.f32 %v2039_v0, %v2035_v54  ;;  %v601_v4 = vpop.f32.mrb[7].mxu1  ;;  %v1580_v54 = vld [vmem:[%s2714_s9 + $0x1c8] sm:$0xff] }
 0x11f   : > { %v633_v5 = vrot.slane %v629_v63, 4  ;;  %v630_v6 = vmul.f32 %v601_v4, %v585_v56  ;;  %1590 = vperm.xlu1 %2158, %v1580_v54   ;;  %v1582_v56 = vld [vmem:[%s2714_s9 + $0x1d8] sm:$0xff] }
 0x120   : > { %v646_v8 = vmax.f32 %v631_v61, %v645_v2  ;;  %v651_v12 = vrot.slane %v632_v3, 4  ;;  %v1684_v4 = vld [vmem:[%s2714_s9 + $0x218] sm:$0xff] }
 0x121   : > { %v634_v14 = vmax.f32 %v629_v63, %v633_v5  ;;  %v639_v15 = vrot.slane %v630_v6, 4  ;;  %1595 = vperm.xlu0 %2157, %v1581_v55  }
 0x122   : > { %v647_v17 = vrot.slane %v646_v8, 2  ;;  %v652_v18 = vmax.f32 %v632_v3, %v651_v12  ;;  %v1685_v12 = vld [vmem:[%s2714_s9 + $0x240] sm:$0xff] }
 0x123   : > { %v635_v19 = vrot.slane %v634_v14, 2  ;;  %v640_v20 = vmax.f32 %v630_v6, %v639_v15  ;;  %v2489_v21 = vpop.f32.mrb[8].mxu1  ;;  %1600 = vperm.xlu1 %2158, %v1582_v56  }
 0x124   : > { %v648_v23 = vmax.f32 %v646_v8, %v647_v17  ;;  %v653_v24 = vrot.slane %v652_v18, 2  ;;  %v2494_v25 = vpop.f32.mrb[9].mxu1 }
 0x125   : > { %v636_v26 = vmax.f32 %v634_v14, %v635_v19  ;;  %v641_v27 = vrot.slane %v640_v20, 2  ;;  %v2496_v28 = vpop.f32.mrb[10].mxu1  ;;  %1725 = vperm.xlu0 %2157, %v1681_v57  }
 0x126   : > { %v649_v30 = vrot.slane %v648_v23, 1  ;;  %v654_v31 = vmax.f32 %v652_v18, %v653_v24  ;;  %v2501_v33 = vpop.f32.mrb[11].mxu1  ;;  %v1686_v18 = vld [vmem:[%s2714_s9 + $0x248] sm:$0xff]  ;;  %v1687_v24 = vld [vmem:[%s2714_s9 + $0x250] sm:$0xff] }
 0x127   : > { %v637_v34 = vrot.slane %v636_v26, 1  ;;  %v642_v35 = vmax.f32 %v640_v20, %v641_v27  ;;  %1730 = vperm.xlu1 %2158, %v1682_v58  }
 0x128   : > { %v650_v37 = vmax.f32 %v648_v23, %v649_v30  ;;  %v655_v38 = vrot.slane %v654_v31, 1 }
 0x129   : > { %v638_v39 = vmax.f32 %v636_v26, %v637_v34  ;;  %v643_v40 = vrot.slane %v642_v35, 1  ;;  %1735 = vperm.xlu0 %2157, %v1683_v62   ;;  %v473_v62 = vld [vmem:[%s428_s26 + $0x10] sm:$0xff] }
 0x12a   : > { %v659_v42 = vsub.f32 %v631_v61, %v650_v37  ;;  %v656_v43 = vmax.f32 %v654_v31, %v655_v38  ;;  %v1688_v31 = vld [vmem:[%s2714_s9 + $0x258] sm:$0xff] }
 0x12b   : > { %v657_v44 = vsub.f32 %v629_v63, %v638_v39  ;;  %v644_v45 = vmax.f32 %v642_v35, %v643_v40  ;;  %1740 = vperm.xlu1 %2158, %v1684_v4  }
 0x12c   : > { %v665_v47 = vmul.f32 1.442695, %v659_v42  ;;  %v660_v48 = vsub.f32 %v632_v3, %v656_v43 }
 0x12d   : > { %v661_v49 = vmul.f32 1.442695, %v657_v44  ;;  %v658_v50 = vsub.f32 %v630_v6, %v644_v45  ;;  %1749 = vperm.xlu0 %2157, %v1685_v12  }
 0x12e   : > { %2185 = vpow2.f32 %v665_v47  ;;  %v667_v52 = vmul.f32 1.442695, %v660_v48 }
 0x12f   : > { %2187 = vpow2.f32 %v661_v49  ;;  %v663_v53 = vmul.f32 1.442695, %v658_v50  ;;  %1754 = vperm.xlu1 %2158, %v1686_v18   ;;  %v2171_v18 = vld [vmem:[%s2710_s5 + $0x10] sm:$0xff]  }
 0x130   : > { %2189 = vpow2.f32 %v667_v52 }
 0x131   : > { %2191 = vpow2.f32 %v663_v53  ;;  %1759 = vperm.xlu0 %2157, %v1687_v24  }
 0x133   : > { %1764 = vperm.xlu1 %2158, %v1688_v31  }
 0x138   : > { %v2186_v59 = vpop.eup %2185 }
 0x139   : > { %v2188_v60 = vpop.eup %2187  ;;  %v681_v61 = vrot.slane %v2186_v59, 4 }
 0x13a   : > { %v2190_v63 = vpop.eup %2189  ;;  %v669_v0 = vrot.slane %v2188_v60, 4 }
 0x13b   : > { %v2192_v1 = vpop.eup %2191  ;;  %v682_v2 = vadd.f32 %v2186_v59, %v681_v61  ;;  %v687_v3 = vrot.slane %v2190_v63, 4 }
 0x13c   : > { %v670_v5 = vadd.f32 %v2188_v60, %v669_v0  ;;  %v675_v6 = vrot.slane %v2192_v1, 4 }
 0x13d   : > { %v683_v7 = vrot.slane %v682_v2, 2  ;;  %v688_v8 = vadd.f32 %v2190_v63, %v687_v3 }
 0x13e   : > { %v671_v14 = vrot.slane %v670_v5, 2  ;;  %v676_v15 = vadd.f32 %v2192_v1, %v675_v6 }
 0x13f   : > { %v684_v16 = vadd.f32 %v683_v7, %v682_v2  ;;  %v689_v17 = vrot.slane %v688_v8, 2 }
 0x140   : > { %v672_v19 = vadd.f32 %v671_v14, %v670_v5  ;;  %v677_v20 = vrot.slane %v676_v15, 2 }
 0x141   : > { %v685_v22 = vrot.slane %v684_v16, 1  ;;  %v690_v23 = vadd.f32 %v689_v17, %v688_v8  ;;  %v2169_v17 = vld [vmem:[%s2709_s4] sm:$0xff]  }
 0x142   : > { %v673_v26 = vrot.slane %v672_v19, 1  ;;  %v678_v27 = vadd.f32 %v677_v20, %v676_v15  ;;  %v2167_v15 = vld [vmem:[%s2710_s5] sm:$0xff]   ;;  %2072 = vmatprep.mubr.msk.bf16.mxu0 %vm529_vm0, %v2169_v17  ;;  %v728_v20 = vpop.permute.xlu0 %727 }
 0x143   : > { %v686_v29 = vadd.f32 %v685_v22, %v684_v16  ;;  %v691_v30 = vrot.slane %v690_v23, 1  ;;  %v2168_v16 = vld [vmem:[%s2710_s5 + $0x8] sm:$0xff]   ;;  %v738_v22 = vpop.permute.xlu1 %737 }
 0x144   : > { %v674_v34 = vadd.f32 %v673_v26, %v672_v19  ;;  %v679_v35 = vrot.slane %v678_v27, 1  ;;  %v2172_v19 = vld [vmem:[%s2710_s5 + $0x18] sm:$0xff]  }
 0x145   : > { %2193 = vrcp.f32 %v686_v29  ;;  %v692_v36 = vadd.f32 %v691_v30, %v690_v23 }
 0x146   : > { %2195 = vrcp.f32 %v674_v34  ;;  %v680_v37 = vadd.f32 %v679_v35, %v678_v27  ;;  %v733_v29 = vpop.permute.xlu0 %732 }
 0x147   : > { %2197 = vrcp.f32 %v692_v36  ;;  %v743_v35 = vpop.permute.xlu1 %742 }
 0x148   : > { %2199 = vrcp.f32 %v680_v37 }
 0x14f   : > { %v2194_v38 = vpop.eup %2193 }
 0x150   : > { %v2196_v39 = vpop.eup %2195  ;;  %v699_v40 = vmul.f32 %v2194_v38, %v2186_v59 }
 0x151   : > { %v2198_v41 = vpop.eup %2197  ;;  %v697_v42 = vmul.f32 %v2196_v39, %v2188_v60  ;;  %v472_v60 = vld [vmem:[%s428_s26 + $0x8] sm:$0xff] }
 0x152   : > { %v2200_v43 = vpop.eup %2199  ;;  %v703_v44 = vmul.f32 %v2489_v21, %v699_v40  ;;  %v700_v45 = vmul.f32 %v2198_v41, %v2190_v63  ;;  %v474_v63 = vld [vmem:[%s428_s26 + $0x18] sm:$0xff] }
 0x153   : > { %v701_v46 = vmul.f32 %v697_v42, %v2494_v25  ;;  %v698_v47 = vmul.f32 %v2200_v43, %v2192_v1  ;;  %v987_v0 = vpack.c.bf16 %v474_v63, %v473_v62 }
 0x154   : > { %v704_v48 = vmul.f32 %v2496_v28, %v700_v45  ;;  %v2166_v28 = vld [vmem:[%s2708_s3 + $0x8] sm:$0xff]  }
 0x155   : > { %v702_v49 = vmul.f32 %v698_v47, %v2501_v33  ;;  %v471_v33 = vld [vmem:[%s428_s26] sm:$0xff]  ;;  %v990_v6 = vunpack.c.l.bf16 %v987_v0  ;;  %v991_v7 = vunpack.c.h.bf16 %v987_v0 }
 0x156   : > { %v706_v50 = vpack.c.bf16 %v704_v48, %v703_v44  ;;  %v986_v61 = vpack.c.bf16 %v472_v60, %v471_v33 }
 0x157   : > { %v705_v51 = vpack.c.bf16 %v702_v49, %v701_v46  ;;  %v994_v8 = vsub.f32 %v473_v62, %v990_v6  ;;  %v995_v12 = vsub.f32 %v474_v63, %v991_v7 }
 0x158   : > { %v710_v52 = vunpack.c.h.bf16 %v706_v50  ;;  %v709_v53 = vunpack.c.l.bf16 %v706_v50  ;;  %v988_v1 = vunpack.c.l.bf16 %v986_v61  ;;  %v989_v2 = vunpack.c.h.bf16 %v986_v61 }
 0x159   : > { %v708_v54 = vunpack.c.h.bf16 %v705_v51  ;;  %2044 = vmatprep.subr.bf16.mxu1 %v705_v51  ;;  %v707_v55 = vunpack.c.l.bf16 %v705_v51  ;;  %v997_v14 = vpack.c.bf16 %v995_v12, %v994_v8 }
 0x15a   : > { %v714_v56 = vsub.f32 %v704_v48, %v710_v52  ;;  %2045 = vmatpush3.bf16.msra.mxu1 %v705_v51  ;;  %v713_v57 = vsub.f32 %v703_v44, %v709_v53  ;;  %v992_v3 = vsub.f32 %v471_v33, %v988_v1  ;;  %v993_v4 = vsub.f32 %v472_v60, %v989_v2  ;;  %v860_v60 = vpop.permute.xlu0 %859 }
 0x15b   : > { %v712_v58 = vsub.f32 %v702_v49, %v708_v54  ;;  %2046 = vmatprep.subr.bf16.mxu1 %v706_v50  ;;  %v711_v21 = vsub.f32 %v701_v46, %v707_v55 }
 0x15c   : > { %v716_v25 = vpack.c.bf16 %v714_v56, %v713_v57  ;;  %v996_v5 = vpack.c.bf16 %v993_v4, %v992_v3 }
 0x15d   : > { %v715_v59 = vpack.c.bf16 %v712_v58, %v711_v21 }
 0x15e   : > { %2047 = vmatpush3.bf16.msra.mxu1 %v706_v50 }
 0x15f   : > { %2048 = vmatprep.subr.bf16.mxu1 %v705_v51 }
 0x162   : > { %2049 = vmatpush3.bf16.msra.mxu1 %v705_v51 }
 0x163   : > { %2050 = vmatprep.subr.bf16.mxu1 %v706_v50 }
 0x166   : > { %2051 = vmatpush3.bf16.msra.mxu1 %v706_v50 }
 0x167   : > { %2052 = vmatprep.subr.bf16.mxu1 %v715_v59 }
 0x16a   : > { %2053 = vmatpush3.bf16.msra.mxu1 %v715_v59 }
 0x16b   : > { %2054 = vmatprep.subr.bf16.mxu1 %v716_v25 }
 0x16e   : > { %2055 = vmatpush3.bf16.msra.mxu1 %v716_v25 }
 0x16f   : > { %2076 = vmatprep.subr.bf16.mxu1 %v986_v61 }
 0x171   : > { %2057 = vmatmul.mubr.msk.bf16.vlgmr.msra.gmra.mrb[12].mxu1 %vm529_vm0, %v2166_v28 }
 0x172   : > { %2077 = vmatpush3.bf16.msra.mxu1 %v986_v61  ;;  %2088 = vmatprep.mubr.msk.bf16.mxu1 %vm529_vm0, %v2167_v15 }
 0x173   : > { %2078 = vmatprep.subr.bf16.mxu1 %v987_v0 }
 0x176   : > { %2079 = vmatpush3.bf16.msra.mxu1 %v987_v0 }
 0x177   : > { %2080 = vmatprep.subr.bf16.mxu1 %v986_v61 }
 0x17a   : > { %2081 = vmatpush3.bf16.msra.mxu1 %v986_v61  ;;  %v865_v61 = vpop.permute.xlu1 %864 }
 0x17b   : > { %2082 = vmatprep.subr.bf16.mxu1 %v987_v0 }
 0x17e   : > { %2083 = vmatpush3.bf16.msra.mxu1 %v987_v0  ;;  %v884_v0 = vpop.permute.xlu0 %883  ;;  %v889_v1 = vpop.permute.xlu1 %888 }
 0x17f   : > { %2084 = vmatprep.subr.bf16.mxu1 %v996_v5 }
 0x182   : > { %2085 = vmatpush3.bf16.msra.mxu1 %v996_v5  ;;  %v870_v2 = vpop.permute.xlu0 %869  ;;  %v875_v3 = vpop.permute.xlu1 %874 }
 0x183   : > { %2086 = vmatprep.subr.bf16.mxu1 %v997_v14 }
 0x186   : > { %2087 = vmatpush3.bf16.msra.mxu1 %v997_v14  ;;  %v894_v17 = vpop.permute.xlu0 %893 }
 0x189   : > { %2089 = vmatmul.mubr.msk.bf16.vlgmr.msra.gmra.mrb[16].mxu1 %vm529_vm0, %v2168_v16 }
 0x18a   : > { %2092 = vmatprep.mubr.msk.bf16.mxu1 %vm529_vm0, %v2171_v18  ;;  %v899_v18 = vpop.permute.xlu1 %898 }
 0x191   : > { %2093 = vmatmul.mubr.msk.bf16.gmra.mrb[20].mxu1 %vm529_vm0, %v2172_v19 }
 0x244   : > { %v2058_v23 = vpop.f32.mrb[12].mxu1 }
 0x245   : > { %v795_v24 = vpop.f32.mrb[13].mxu1  ;;  %v804_v31 = vadd.f32 %v2058_v23, %v738_v22 }
 0x246   : > { %v796_v26 = vadd.f32 %v795_v24, %v728_v20  ;;  %v2059_v27 = vpop.f32.mrb[14].mxu1 }
 0x247   : > { %v798_v30 = vpop.f32.mrb[15].mxu1  ;;  %v807_v37 = vadd.f32 %v2059_v27, %v743_v35  ;;  %v812_v39 = vadd.f32 %v804_v31, %v2370_v11 }
 0x248   : > { %v799_v34 = vadd.f32 %v798_v30, %v733_v29  ;;  %v810_v36 = vadd.f32 %v796_v26, %v2366_v9 }
 0x249   : > { %v813_v41 = vadd.f32 %v807_v37, %v2374_v13 }
 0x24a   : > { %v811_v38 = vadd.f32 %v799_v34, %v2368_v10 }
 0x24c   : > { %v822_v40 = vadd.f32 %v811_v38, %v810_v36 }
 0x24e   : > { %v823_v42 = vadd.f32 %v822_v40, %v812_v39  ;;  %v2170_v40 = vld [vmem:[%s2709_s4 + $0x8] sm:$0xff]  }
 0x250   : > { %v824_v43 = vadd.f32 %v823_v42, %v813_v41 }
 0x252   : > { %v825_v44 = vrot.slane %v824_v43, 4 }
 0x254   : > { %v826_v45 = vadd.f32 %v825_v44, %v824_v43 }
 0x256   : > { %v827_v46 = vrot.slane %v826_v45, 2 }
 0x258   : > { %v828_v47 = vadd.f32 %v827_v46, %v826_v45 }
 0x25a   : > { %v829_v48 = vrot.slane %v828_v47, 1 }
 0x25c   : > { %v830_v49 = vadd.f32 %v829_v48, %v828_v47 }
 0x25e   : > { %v832_v50 = vmul.f32 0.03125, %v830_v49  ;;  %v2173_v49 = vld [vmem:[%s2711_s6] sm:$0xff]  }
 0x260   : > { %v833_v51 = vsub.f32 %v810_v36, %v832_v50  ;;  %v834_v52 = vsub.f32 %v811_v38, %v832_v50  ;;  %v835_v9 = vsub.f32 %v812_v39, %v832_v50  ;;  %v836_v53 = vsub.f32 %v813_v41, %v832_v50  ;;  %v2090_v41 = vpop.f32.mrb[16].mxu1 }
 0x261   : > { %v1072_v42 = vpop.f32.mrb[17].mxu1 }
 0x262   : > { %v837_v54 = vmul.f32 %v833_v51, %v833_v51  ;;  %v838_v10 = vmul.f32 %v834_v52, %v834_v52  ;;  %v839_v55 = vmul.f32 %v835_v9, %v835_v9  ;;  %v840_v56 = vmul.f32 %v836_v53, %v836_v53  ;;  %v2091_v43 = vpop.f32.mrb[18].mxu1 }
 0x263   : > { %v1075_v44 = vpop.f32.mrb[19].mxu1 }
 0x264   : > { %v841_v11 = vadd.f32 %v838_v10, %v837_v54  ;;  %v2601_v45 = vpop.f32.mrb[20].mxu1 }
 0x265   : > { %v2603_v46 = vpop.f32.mrb[21].mxu1 }
 0x266   : > { %v842_v57 = vadd.f32 %v841_v11, %v839_v55  ;;  %v2605_v47 = vpop.f32.mrb[22].mxu1 }
 0x267   : > { %v2607_v48 = vpop.f32.mrb[23].mxu1 }
 0x268   : > { %v843_v13 = vadd.f32 %v842_v57, %v840_v56 }
 0x26a   : > { %v844_v58 = vrot.slane %v843_v13, 4 }
 0x26c   : > { %v845_v21 = vadd.f32 %v844_v58, %v843_v13 }
 0x26e   : > { %v846_v25 = vrot.slane %v845_v21, 2 }
 0x270   : > { %v847_v59 = vadd.f32 %v846_v25, %v845_v21 }
 0x272   : > { %v848_v28 = vrot.slane %v847_v59, 1 }
 0x274   : > { %v849_v33 = vadd.f32 %v848_v28, %v847_v59 }
 0x276   : > { %v850_v62 = vmul.f32 0.03125, %v849_v33 }
 0x278   : > { %v851_v63 = vadd.f32 1e-05, %v850_v62 }
 0x27a   : > { %2201 = vrsqrt.f32 %v851_v63 }
 0x284   : > { %v2202_v4 = vpop.eup %2201 }
 0x285   : > { %v853_v5 = vmul.f32 %v2202_v4, %v833_v51  ;;  %v854_v6 = vmul.f32 %v2202_v4, %v834_v52  ;;  %v855_v7 = vmul.f32 %v2202_v4, %v835_v9  ;;  %v856_v8 = vmul.f32 %v2202_v4, %v836_v53 }
 0x287   : > { %v877_v12 = vmul.f32 %v860_v60, %v853_v5  ;;  %v878_v14 = vmul.f32 %v865_v61, %v854_v6  ;;  %v879_v15 = vmul.f32 %v870_v2, %v855_v7  ;;  %v880_v16 = vmul.f32 %v875_v3, %v856_v8 }
 0x289   : > { %v2581_v19 = vadd.f32 %v884_v0, %v877_v12  ;;  %v2583_v20 = vadd.f32 %v889_v1, %v878_v14  ;;  %v2585_v22 = vadd.f32 %v894_v17, %v879_v15  ;;  %v2587_v23 = vadd.f32 %v899_v18, %v880_v16 }
 0x28b   : > { %v905_v24 = vpack.c.bf16 %v2583_v20, %v2581_v19  ;;  %v906_v26 = vpack.c.bf16 %v2587_v23, %v2585_v22 }
 0x28d   : > { %2060 = vmatprep.subr.bf16.mxu0 %v905_v24  ;;  %v907_v27 = vunpack.c.l.bf16 %v905_v24  ;;  %v908_v29 = vunpack.c.h.bf16 %v905_v24  ;;  %v909_v34 = vunpack.c.l.bf16 %v906_v26  ;;  %v910_v35 = vunpack.c.h.bf16 %v906_v26 }
 0x28e   : > { %2061 = vmatpush3.bf16.msra.mxu0 %v905_v24 }
 0x28f   : > { %2062 = vmatprep.subr.bf16.mxu0 %v906_v26  ;;  %v911_v30 = vsub.f32 %v2581_v19, %v907_v27  ;;  %v912_v31 = vsub.f32 %v2583_v20, %v908_v29  ;;  %v913_v37 = vsub.f32 %v2585_v22, %v909_v34  ;;  %v914_v38 = vsub.f32 %v2587_v23, %v910_v35 }
 0x291   : > { %v915_v36 = vpack.c.bf16 %v912_v31, %v911_v30  ;;  %v916_v39 = vpack.c.bf16 %v914_v38, %v913_v37 }
 0x292   : > { %2063 = vmatpush3.bf16.msra.mxu0 %v906_v26 }
 0x293   : > { %2064 = vmatprep.subr.bf16.mxu0 %v905_v24 }
 0x296   : > { %2065 = vmatpush3.bf16.msra.mxu0 %v905_v24 }
 0x297   : > { %2066 = vmatprep.subr.bf16.mxu0 %v906_v26 }
 0x29a   : > { %2067 = vmatpush3.bf16.msra.mxu0 %v906_v26 }
 0x29b   : > { %2068 = vmatprep.subr.bf16.mxu0 %v915_v36 }
 0x29e   : > { %2069 = vmatpush3.bf16.msra.mxu0 %v915_v36 }
 0x29f   : > { %2070 = vmatprep.subr.bf16.mxu0 %v916_v39 }
 0x2a2   : > { %2071 = vmatpush3.bf16.msra.mxu0 %v916_v39 }
 0x2a5   : > { %2073 = vmatmul.mubr.msk.bf16.vlgmr.msra.gmra.mrb[0].mxu0 %vm529_vm0, %v2170_v40 }
 0x2a6   : > { %2108 = vmatprep.mubr.msk.bf16.mxu0 %vm529_vm0, %v2173_v49 }
 0x378   : > { %v2074_v50 = vpop.f32.mrb[0].mxu0 }
 0x379   : > { %v1105_v51 = vmul.f32 %v2090_v41, %v2074_v50  ;;  %v971_v52 = vpop.f32.mrb[1].mxu0 }
 0x37a   : > { %v1103_v9 = vmul.f32 %v1072_v42, %v971_v52  ;;  %v2075_v53 = vpop.f32.mrb[2].mxu0 }
 0x37b   : > { %v1119_v54 = vrot.slane %v1105_v51, 4  ;;  %v1106_v10 = vmul.f32 %v2091_v43, %v2075_v53  ;;  %v974_v55 = vpop.f32.mrb[3].mxu0 }
 0x37c   : > { %v1107_v11 = vrot.slane %v1103_v9, 4  ;;  %v1104_v56 = vmul.f32 %v1075_v44, %v974_v55 }
 0x37d   : > { %v1120_v57 = vmax.f32 %v1105_v51, %v1119_v54  ;;  %v1125_v13 = vrot.slane %v1106_v10, 4 }
 0x37e   : > { %v1108_v58 = vmax.f32 %v1103_v9, %v1107_v11  ;;  %v1113_v21 = vrot.slane %v1104_v56, 4 }
 0x37f   : > { %v1121_v25 = vrot.slane %v1120_v57, 2  ;;  %v1126_v59 = vmax.f32 %v1106_v10, %v1125_v13 }
 0x380   : > { %v1109_v28 = vrot.slane %v1108_v58, 2  ;;  %v1114_v33 = vmax.f32 %v1104_v56, %v1113_v21 }
 0x381   : > { %v1122_v60 = vmax.f32 %v1120_v57, %v1121_v25  ;;  %v1127_v61 = vrot.slane %v1126_v59, 2 }
 0x382   : > { %v1110_v62 = vmax.f32 %v1108_v58, %v1109_v28  ;;  %v1115_v63 = vrot.slane %v1114_v33, 2 }
 0x383   : > { %v1123_v0 = vrot.slane %v1122_v60, 1  ;;  %v1128_v1 = vmax.f32 %v1126_v59, %v1127_v61 }
 0x384   : > { %v1111_v2 = vrot.slane %v1110_v62, 1  ;;  %v1116_v3 = vmax.f32 %v1114_v33, %v1115_v63 }
 0x385   : > { %v1124_v4 = vmax.f32 %v1122_v60, %v1123_v0  ;;  %v1129_v5 = vrot.slane %v1128_v1, 1 }
 0x386   : > { %v1112_v6 = vmax.f32 %v1110_v62, %v1111_v2  ;;  %v1117_v7 = vrot.slane %v1116_v3, 1 }
 0x387   : > { %v1133_v8 = vsub.f32 %v1105_v51, %v1124_v4  ;;  %v1130_v12 = vmax.f32 %v1128_v1, %v1129_v5 }
 0x388   : > { %v1131_v14 = vsub.f32 %v1103_v9, %v1112_v6  ;;  %v1118_v15 = vmax.f32 %v1116_v3, %v1117_v7 }
 0x389   : > { %v1139_v16 = vmul.f32 1.442695, %v1133_v8  ;;  %v1134_v17 = vsub.f32 %v1106_v10, %v1130_v12 }
 0x38a   : > { %v1135_v18 = vmul.f32 1.442695, %v1131_v14  ;;  %v1132_v24 = vsub.f32 %v1104_v56, %v1118_v15 }
 0x38b   : > { %2203 = vpow2.f32 %v1139_v16  ;;  %v1141_v26 = vmul.f32 1.442695, %v1134_v17  ;;  %v1202_v17 = vpop.permute.xlu0 %1201 }
 0x38c   : > { %2205 = vpow2.f32 %v1135_v18  ;;  %v1137_v27 = vmul.f32 1.442695, %v1132_v24  ;;  %v1207_v18 = vpop.permute.xlu1 %1206 }
 0x38d   : > { %2207 = vpow2.f32 %v1141_v26 }
 0x38e   : > { %2209 = vpow2.f32 %v1137_v27 }
 0x395   : > { %v2204_v29 = vpop.eup %2203 }
 0x396   : > { %v2206_v30 = vpop.eup %2205  ;;  %v1155_v31 = vrot.slane %v2204_v29, 4 }
 0x397   : > { %v2208_v34 = vpop.eup %2207  ;;  %v1143_v35 = vrot.slane %v2206_v30, 4 }
 0x398   : > { %v2210_v36 = vpop.eup %2209  ;;  %v1156_v37 = vadd.f32 %v2204_v29, %v1155_v31  ;;  %v1161_v38 = vrot.slane %v2208_v34, 4 }
 0x399   : > { %v1144_v39 = vadd.f32 %v2206_v30, %v1143_v35  ;;  %v1149_v40 = vrot.slane %v2210_v36, 4 }
 0x39a   : > { %v1157_v41 = vrot.slane %v1156_v37, 2  ;;  %v1162_v42 = vadd.f32 %v2208_v34, %v1161_v38 }
 0x39b   : > { %v1145_v43 = vrot.slane %v1144_v39, 2  ;;  %v1150_v44 = vadd.f32 %v2210_v36, %v1149_v40 }
 0x39c   : > { %v1158_v49 = vadd.f32 %v1157_v41, %v1156_v37  ;;  %v1163_v50 = vrot.slane %v1162_v42, 2 }
 0x39d   : > { %v1146_v51 = vadd.f32 %v1145_v43, %v1144_v39  ;;  %v1151_v52 = vrot.slane %v1150_v44, 2 }
 0x39e   : > { %v1159_v9 = vrot.slane %v1158_v49, 1  ;;  %v1164_v53 = vadd.f32 %v1163_v50, %v1162_v42 }
 0x39f   : > { %v1147_v54 = vrot.slane %v1146_v51, 1  ;;  %v1152_v10 = vadd.f32 %v1151_v52, %v1150_v44 }
 0x3a0   : > { %v1160_v55 = vadd.f32 %v1159_v9, %v1158_v49  ;;  %v1165_v11 = vrot.slane %v1164_v53, 1 }
 0x3a1   : > { %v1148_v56 = vadd.f32 %v1147_v54, %v1146_v51  ;;  %v1153_v57 = vrot.slane %v1152_v10, 1 }
 0x3a2   : > { %2211 = vrcp.f32 %v1160_v55  ;;  %v1166_v13 = vadd.f32 %v1165_v11, %v1164_v53 }
 0x3a3   : > { %2213 = vrcp.f32 %v1148_v56  ;;  %v1154_v58 = vadd.f32 %v1153_v57, %v1152_v10 }
 0x3a4   : > { %2215 = vrcp.f32 %v1166_v13 }
 0x3a5   : > { %2217 = vrcp.f32 %v1154_v58 }
 0x3ac   : > { %v2212_v21 = vpop.eup %2211 }
 0x3ad   : > { %v2214_v25 = vpop.eup %2213  ;;  %v1173_v59 = vmul.f32 %v2212_v21, %v2204_v29 }
 0x3ae   : > { %v2216_v28 = vpop.eup %2215  ;;  %v1171_v33 = vmul.f32 %v2214_v25, %v2206_v30  ;;  %v1212_v30 = vpop.permute.xlu0 %1211 }
 0x3af   : > { %v2218_v60 = vpop.eup %2217  ;;  %v1177_v61 = vmul.f32 %v2601_v45, %v1173_v59  ;;  %v1174_v62 = vmul.f32 %v2216_v28, %v2208_v34 }
 0x3b0   : > { %v1175_v63 = vmul.f32 %v1171_v33, %v2603_v46  ;;  %v1172_v0 = vmul.f32 %v2218_v60, %v2210_v36  ;;  %v1217_v36 = vpop.permute.xlu1 %1216 }
 0x3b1   : > { %v1178_v1 = vmul.f32 %v2605_v47, %v1174_v62  ;;  %v2174_v47 = vld [vmem:[%s2711_s6 + $0x8] sm:$0xff]  }
 0x3b2   : > { %v1176_v2 = vmul.f32 %v1172_v0, %v2607_v48  ;;  %v2175_v48 = vld [vmem:[%s2712_s7] sm:$0xff]  }
 0x3b3   : > { %v1180_v3 = vpack.c.bf16 %v1178_v1, %v1177_v61  ;;  %2124 = vmatprep.mubr.msk.bf16.mxu1 %vm529_vm0, %v2175_v48 }
 0x3b4   : > { %v1179_v4 = vpack.c.bf16 %v1176_v2, %v1175_v63  ;;  %v1338_v62 = vpop.permute.xlu1 %1337 }
 0x3b5   : > { %v1184_v5 = vunpack.c.h.bf16 %v1180_v3  ;;  %v1183_v6 = vunpack.c.l.bf16 %v1180_v3 }
 0x3b6   : > { %v1182_v7 = vunpack.c.h.bf16 %v1179_v4  ;;  %2096 = vmatprep.subr.bf16.mxu0 %v1179_v4  ;;  %v1181_v8 = vunpack.c.l.bf16 %v1179_v4 }
 0x3b7   : > { %v1188_v12 = vsub.f32 %v1178_v1, %v1184_v5  ;;  %2097 = vmatpush3.bf16.msra.mxu0 %v1179_v4  ;;  %v1187_v14 = vsub.f32 %v1177_v61, %v1183_v6  ;;  %v1333_v61 = vpop.permute.xlu0 %1332 }
 0x3b8   : > { %v1186_v15 = vsub.f32 %v1176_v2, %v1182_v7  ;;  %2098 = vmatprep.subr.bf16.mxu0 %v1180_v3  ;;  %v1185_v45 = vsub.f32 %v1175_v63, %v1181_v8  ;;  %v1362_v2 = vpop.permute.xlu1 %1361 }
 0x3b9   : > { %v1190_v16 = vpack.c.bf16 %v1188_v12, %v1187_v14 }
 0x3ba   : > { %v1189_v46 = vpack.c.bf16 %v1186_v15, %v1185_v45 }
 0x3bb   : > { %2099 = vmatpush3.bf16.msra.mxu0 %v1180_v3  ;;  %v1357_v1 = vpop.permute.xlu0 %1356 }
 0x3bc   : > { %2100 = vmatprep.subr.bf16.mxu0 %v1179_v4 }
 0x3bf   : > { %2101 = vmatpush3.bf16.msra.mxu0 %v1179_v4  ;;  %v1348_v4 = vpop.permute.xlu1 %1347 }
 0x3c0   : > { %2102 = vmatprep.subr.bf16.mxu0 %v1180_v3 }
 0x3c3   : > { %2103 = vmatpush3.bf16.msra.mxu0 %v1180_v3  ;;  %v1343_v3 = vpop.permute.xlu0 %1342 }
 0x3c4   : > { %2104 = vmatprep.subr.bf16.mxu0 %v1189_v46 }
 0x3c7   : > { %2105 = vmatpush3.bf16.msra.mxu0 %v1189_v46  ;;  %v1367_v46 = vpop.permute.xlu0 %1366 }
 0x3c8   : > { %2106 = vmatprep.subr.bf16.mxu0 %v1190_v16 }
 0x3cb   : > { %2107 = vmatpush3.bf16.msra.mxu0 %v1190_v16 }
 0x3cc   : > { %1628 = vmatprep.subr.bf16.mxu0 %v2247_v32 }
 0x3ce   : > { %2109 = vmatmul.mubr.msk.bf16.vlgmr.msra.gmra.mrb[4].mxu0 %vm529_vm0, %v2174_v47  ;;  %v1372_v47 = vpop.permute.xlu1 %1371 }
 0x4a1   : > { %v2110_v24 = vpop.f32.mrb[4].mxu0 }
 0x4a2   : > { %v1269_v26 = vpop.f32.mrb[5].mxu0  ;;  %v1278_v34 = vadd.f32 %v2110_v24, %v1212_v30 }
 0x4a3   : > { %v1270_v27 = vadd.f32 %v1269_v26, %v1202_v17  ;;  %v2111_v29 = vpop.f32.mrb[6].mxu0 }
 0x4a4   : > { %v1272_v31 = vpop.f32.mrb[7].mxu0  ;;  %v1281_v38 = vadd.f32 %v2111_v29, %v1217_v36  ;;  %v1286_v40 = vadd.f32 %v1278_v34, %v2585_v22 }
 0x4a5   : > { %v1273_v35 = vadd.f32 %v1272_v31, %v1207_v18  ;;  %v1284_v37 = vadd.f32 %v1270_v27, %v2581_v19 }
 0x4a6   : > { %v1287_v42 = vadd.f32 %v1281_v38, %v2587_v23 }
 0x4a7   : > { %v1285_v39 = vadd.f32 %v1273_v35, %v2583_v20 }
 0x4a9   : > { %v1296_v41 = vadd.f32 %v1285_v39, %v1284_v37 }
 0x4ab   : > { %v1297_v43 = vadd.f32 %v1296_v41, %v1286_v40  ;;  %v2176_v41 = vld [vmem:[%s2712_s7 + $0x8] sm:$0xff]  }
 0x4ad   : > { %v1298_v44 = vadd.f32 %v1297_v43, %v1287_v42  ;;  %v2178_v43 = vld [vmem:[%s2712_s7 + $0x18] sm:$0xff]  }
 0x4af   : > { %v1299_v49 = vrot.slane %v1298_v44, 4 }
 0x4b1   : > { %v1300_v50 = vadd.f32 %v1299_v49, %v1298_v44  ;;  %v2179_v44 = vld [vmem:[%s2713_s8 + $0x4] ss:$8 sps:$4 sm:$0xff]   ;;  %v1409_v49 = vpop.permute.xlu0 %1408 }
 0x4b2   : > { %1958 = vmatprep.mubr.msk.bf16.mxu0 %vm1621_vm1, %v2179_v44  ;;  %v2184_v44 = vld [vmem:[%s2713_s8 + $0x10] ss:$8 sps:$4 sm:$0xff]  }
 0x4b3   : > { %v1301_v51 = vrot.slane %v1300_v50, 2 }
 0x4b5   : > { %v1302_v52 = vadd.f32 %v1301_v51, %v1300_v50  ;;  %v1414_v50 = vpop.permute.xlu1 %1413  ;;  %v1419_v51 = vpop.permute.xlu0 %1418 }
 0x4b7   : > { %v1303_v9 = vrot.slane %v1302_v52, 1 }
 0x4b9   : > { %v1304_v53 = vadd.f32 %v1303_v9, %v1302_v52  ;;  %v1424_v52 = vpop.permute.xlu1 %1423 }
 0x4bb   : > { %v1305_v54 = vmul.f32 0.03125, %v1304_v53 }
 0x4bd   : > { %v1306_v10 = vsub.f32 %v1284_v37, %v1305_v54  ;;  %v1307_v55 = vsub.f32 %v1285_v39, %v1305_v54  ;;  %v1308_v19 = vsub.f32 %v1286_v40, %v1305_v54  ;;  %v1309_v11 = vsub.f32 %v1287_v42, %v1305_v54  ;;  %v2177_v42 = vld [vmem:[%s2712_s7 + $0x10] sm:$0xff]  }
 0x4bf   : > { %v1310_v56 = vmul.f32 %v1306_v10, %v1306_v10  ;;  %v1311_v20 = vmul.f32 %v1307_v55, %v1307_v55  ;;  %v1312_v57 = vmul.f32 %v1308_v19, %v1308_v19  ;;  %v1313_v13 = vmul.f32 %v1309_v11, %v1309_v11 }
 0x4c1   : > { %v1314_v22 = vadd.f32 %v1311_v20, %v1310_v56  ;;  %v1434_v20 = vpop.permute.xlu1 %1433 }
 0x4c3   : > { %v1315_v58 = vadd.f32 %v1314_v22, %v1312_v57 }
 0x4c5   : > { %v1316_v23 = vadd.f32 %v1315_v58, %v1313_v13 }
 0x4c7   : > { %v1317_v21 = vrot.slane %v1316_v23, 4 }
 0x4c9   : > { %v1318_v25 = vadd.f32 %v1317_v21, %v1316_v23 }
 0x4cb   : > { %v1319_v59 = vrot.slane %v1318_v25, 2 }
 0x4cd   : > { %v1320_v28 = vadd.f32 %v1319_v59, %v1318_v25 }
 0x4cf   : > { %v1321_v33 = vrot.slane %v1320_v28, 1 }
 0x4d1   : > { %v1322_v60 = vadd.f32 %v1321_v33, %v1320_v28 }
 0x4d3   : > { %v1323_v63 = vmul.f32 0.03125, %v1322_v60 }
 0x4d5   : > { %v1324_v0 = vadd.f32 1e-05, %v1323_v63  ;;  %v1444_v63 = vpop.permute.xlu1 %1443 }
 0x4d7   : > { %2219 = vrsqrt.f32 %v1324_v0 }
 0x4e1   : > { %v2220_v5 = vpop.eup %2219 }
 0x4e2   : > { %v1326_v6 = vmul.f32 %v2220_v5, %v1306_v10  ;;  %v1327_v7 = vmul.f32 %v2220_v5, %v1307_v55  ;;  %v1328_v8 = vmul.f32 %v2220_v5, %v1308_v19  ;;  %v1329_v12 = vmul.f32 %v2220_v5, %v1309_v11  ;;  %v1429_v10 = vpop.permute.xlu0 %1428 }
 0x4e4   : > { %v1350_v14 = vmul.f32 %v1333_v61, %v1326_v6  ;;  %v1351_v15 = vmul.f32 %v1338_v62, %v1327_v7  ;;  %v1352_v45 = vmul.f32 %v1343_v3, %v1328_v8  ;;  %v1353_v16 = vmul.f32 %v1348_v4, %v1329_v12 }
 0x4e6   : > { %v2630_v48 = vadd.f32 %v1357_v1, %v1350_v14  ;;  %v2632_v17 = vadd.f32 %v1362_v2, %v1351_v15  ;;  %v2634_v18 = vadd.f32 %v1367_v46, %v1352_v45  ;;  %v2636_v24 = vadd.f32 %v1372_v47, %v1353_v16  ;;  %v1439_v25 = vpop.permute.xlu0 %1438 }
 0x4e8   : > { %v1378_v26 = vpack.c.bf16 %v2632_v17, %v2630_v48  ;;  %v1379_v27 = vpack.c.bf16 %v2636_v24, %v2634_v18 }
 0x4ea   : > { %2112 = vmatprep.subr.bf16.mxu1 %v1378_v26  ;;  %v1380_v29 = vunpack.c.l.bf16 %v1378_v26  ;;  %v1381_v30 = vunpack.c.h.bf16 %v1378_v26  ;;  %v1382_v35 = vunpack.c.l.bf16 %v1379_v27  ;;  %v1383_v36 = vunpack.c.h.bf16 %v1379_v27 }
 0x4eb   : > { %2113 = vmatpush3.bf16.msra.mxu1 %v1378_v26 }
 0x4ec   : > { %2114 = vmatprep.subr.bf16.mxu1 %v1379_v27  ;;  %v1384_v31 = vsub.f32 %v2630_v48, %v1380_v29  ;;  %v1385_v34 = vsub.f32 %v2632_v17, %v1381_v30  ;;  %v1386_v38 = vsub.f32 %v2634_v18, %v1382_v35  ;;  %v1387_v39 = vsub.f32 %v2636_v24, %v1383_v36 }
 0x4ee   : > { %v1388_v37 = vpack.c.bf16 %v1385_v34, %v1384_v31  ;;  %v1389_v40 = vpack.c.bf16 %v1387_v39, %v1386_v38 }
 0x4ef   : > { %2115 = vmatpush3.bf16.msra.mxu1 %v1379_v27 }
 0x4f0   : > { %2116 = vmatprep.subr.bf16.mxu1 %v1378_v26 }
 0x4f3   : > { %2117 = vmatpush3.bf16.msra.mxu1 %v1378_v26 }
 0x4f4   : > { %2118 = vmatprep.subr.bf16.mxu1 %v1379_v27 }
 0x4f7   : > { %2119 = vmatpush3.bf16.msra.mxu1 %v1379_v27 }
 0x4f8   : > { %2120 = vmatprep.subr.bf16.mxu1 %v1388_v37 }
 0x4fb   : > { %2121 = vmatpush3.bf16.msra.mxu1 %v1388_v37 }
 0x4fc   : > { %2122 = vmatprep.subr.bf16.mxu1 %v1389_v40 }
 0x4ff   : > { %2123 = vmatpush3.bf16.msra.mxu1 %v1389_v40 }
 0x502   : > { %2125 = vmatmul.mubr.msk.bf16.vlgmr.msra.gmra.mrb[24].mxu1 %vm529_vm0, %v2176_v41 }
 0x503   : > { %2128 = vmatprep.mubr.msk.bf16.mxu1 %vm529_vm0, %v2177_v42  ;;  %v2181_v42 = vld [vmem:[%s2713_s8] ss:$8 sps:$4 sm:$0xff]  }
 0x50a   : > { %2129 = vmatmul.mubr.msk.bf16.gmra.mrb[28].mxu1 %vm529_vm0, %v2178_v43  ;;  %v2182_v43 = vld [vmem:[%s2713_s8 + $0x14] ss:$8 sps:$4 sm:$0xff]  }
 0x5d5   : > { %v2126_v9 = vpop.f32.mrb[24].mxu1 }
 0x5d6   : > { %v1521_v53 = vadd.f32 %v2126_v9, %v1419_v51  ;;  %v1512_v54 = vpop.f32.mrb[25].mxu1 }
 0x5d7   : > { %v1513_v55 = vadd.f32 %v1512_v54, %v1409_v49  ;;  %v2127_v19 = vpop.f32.mrb[26].mxu1  ;;  %v1586_v49 = vpop.permute.xlu0 %1585 }
 0x5d8   : > { %v1524_v11 = vadd.f32 %v2127_v19, %v1424_v52  ;;  %v1515_v56 = vpop.f32.mrb[27].mxu1  ;;  %v1545_v22 = vmax.f32 %v1521_v53, 0.0  ;;  %v1591_v52 = vpop.permute.xlu1 %1590 }
 0x5d9   : > { %v1516_v57 = vadd.f32 %v1515_v56, %v1414_v50  ;;  %v1543_v58 = vmax.f32 %v1513_v55, 0.0 }
 0x5da   : > { %v1546_v13 = vmax.f32 %v1524_v11, 0.0 }
 0x5db   : > { %v1544_v23 = vmax.f32 %v1516_v57, 0.0  ;;  %v1596_v11 = vpop.permute.xlu0 %1595 }
 0x5dc   : > { %v1552_v21 = vpack.c.bf16 %v1546_v13, %v1545_v22 }
 0x5dd   : > { %v1551_v59 = vpack.c.bf16 %v1544_v23, %v1543_v58  ;;  %v2130_v28 = vpop.f32.mrb[28].mxu1 }
 0x5de   : > { %v1557_v33 = vunpack.c.l.bf16 %v1552_v21  ;;  %v1558_v60 = vunpack.c.h.bf16 %v1552_v21  ;;  %v1537_v61 = vadd.f32 %v2130_v28, %v1439_v25  ;;  %v1528_v62 = vpop.f32.mrb[29].mxu1 }
 0x5df   : > { %v1555_v0 = vunpack.c.l.bf16 %v1551_v59  ;;  %v1556_v1 = vunpack.c.h.bf16 %v1551_v59  ;;  %v1529_v2 = vadd.f32 %v1528_v62, %v1429_v10  ;;  %v2131_v3 = vpop.f32.mrb[30].mxu1  ;;  %1629 = vmatpush1.bf16.msra.mxu0 %v1551_v59 }
 0x5e0   : > { %v1565_v4 = vsub.f32 %v1545_v22, %v1557_v33  ;;  %v1566_v5 = vsub.f32 %v1546_v13, %v1558_v60  ;;  %v1540_v6 = vadd.f32 %v2131_v3, %v1444_v63  ;;  %v1531_v7 = vpop.f32.mrb[31].mxu1  ;;  %1630 = vmatprep.subr.bf16.mxu0 %v2247_v32  ;;  %v1549_v45 = vmax.f32 %v1537_v61, 0.0  ;;  %v1601_v22 = vpop.permute.xlu1 %1600 }
 0x5e1   : > { %v1563_v8 = vsub.f32 %v1543_v58, %v1555_v0  ;;  %v1564_v12 = vsub.f32 %v1544_v23, %v1556_v1  ;;  %v1532_v14 = vadd.f32 %v1531_v7, %v1434_v20  ;;  %v1547_v47 = vmax.f32 %v1529_v2, 0.0 }
 0x5e2   : > { %v1572_v15 = vpack.c.bf16 %v1566_v5, %v1565_v4  ;;  %v1550_v16 = vmax.f32 %v1540_v6, 0.0 }
 0x5e3   : > { %v1571_v46 = vpack.c.bf16 %v1564_v12, %v1563_v8  ;;  %v1548_v26 = vmax.f32 %v1532_v14, 0.0  ;;  %1631 = vmatpush1.bf16.msra.mxu0 %v1552_v21 }
 0x5e4   : > { %v1554_v27 = vpack.c.bf16 %v1550_v16, %v1549_v45  ;;  %1632 = vmatprep.subr.bf16.mxu0 %v2247_v32 }
 0x5e5   : > { %v1553_v29 = vpack.c.bf16 %v1548_v26, %v1547_v47 }
 0x5e6   : > { %v1561_v30 = vunpack.c.l.bf16 %v1554_v27  ;;  %v1562_v31 = vunpack.c.h.bf16 %v1554_v27 }
 0x5e7   : > { %v1559_v34 = vunpack.c.l.bf16 %v1553_v29  ;;  %v1560_v35 = vunpack.c.h.bf16 %v1553_v29  ;;  %1633 = vmatpush1.bf16.msra.mxu0 %v1553_v29 }
 0x5e8   : > { %v1569_v36 = vsub.f32 %v1549_v45, %v1561_v30  ;;  %v1570_v37 = vsub.f32 %v1550_v16, %v1562_v31  ;;  %1634 = vmatprep.subr.bf16.mxu0 %v2247_v32 }
 0x5e9   : > { %v1567_v38 = vsub.f32 %v1547_v47, %v1559_v34  ;;  %v1568_v39 = vsub.f32 %v1548_v26, %v1560_v35  ;;  %v1726_v47 = vpop.permute.xlu0 %1725  ;;  %v1731_v26 = vpop.permute.xlu1 %1730 }
 0x5ea   : > { %v1574_v40 = vpack.c.bf16 %v1570_v37, %v1569_v36 }
 0x5eb   : > { %v1573_v41 = vpack.c.bf16 %v1568_v39, %v1567_v38  ;;  %1635 = vmatpush1.bf16.msra.mxu0 %v1554_v27 }
 0x5ec   : > { %1636 = vmatprep.subr.bf16.mxu0 %v2247_v32 }
 0x5ed   : > { %v1736_v30 = vpop.permute.xlu0 %1735  ;;  %v1741_v31 = vpop.permute.xlu1 %1740 }
 0x5ef   : > { %1637 = vmatpush1.bf16.msra.mxu0 %v1551_v59 }
 0x5f0   : > { %1638 = vmatprep.subr.bf16.mxu0 %v2247_v32 }
 0x5f1   : > { %v1750_v34 = vpop.permute.xlu0 %1749  ;;  %v1755_v35 = vpop.permute.xlu1 %1754 }
 0x5f3   : > { %1639 = vmatpush1.bf16.msra.mxu0 %v1552_v21 }
 0x5f4   : > { %1640 = vmatprep.subr.bf16.mxu0 %v2247_v32 }
 0x5f7   : > { %1641 = vmatpush1.bf16.msra.mxu0 %v1553_v29 }
 0x5f8   : > { %1642 = vmatprep.subr.bf16.mxu0 %v2247_v32 }
 0x5fb   : > { %1643 = vmatpush1.bf16.msra.mxu0 %v1554_v27 }
 0x5fc   : > { %1644 = vmatprep.subr.bf16.mxu0 %v2247_v32 }
 0x5ff   : > { %1645 = vmatpush1.bf16.msra.mxu0 %v1571_v46 }
 0x600   : > { %1646 = vmatprep.subr.bf16.mxu0 %v2247_v32 }
 0x603   : > { %1647 = vmatpush1.bf16.msra.mxu0 %v1572_v15 }
 0x604   : > { %1648 = vmatprep.subr.bf16.mxu0 %v2247_v32 }
 0x607   : > { %1649 = vmatpush1.bf16.msra.mxu0 %v1573_v41 }
 0x608   : > { %1650 = vmatprep.subr.bf16.mxu0 %v2247_v32 }
 0x60b   : > { %1651 = vmatpush1.bf16.msra.mxu0 %v1574_v40 }
 0x60e   : > { %1661 = vmatmul.mubr.bf16.vlgmr.msra.gmra.mrb[8].mxu0 %v2181_v42 }
 0x60f   : > { %1959 = vmatprep.mubr.msk.bf16.mxu0 %vm1621_vm1, %v2182_v43 }
 0x616   : > { %1669 = vmatmul.mubr.bf16.gmra.mrb[12].mxu0 %v2184_v44 }
 0x6e1   : > { %v1662_v50 = vpop.f32.mrb[8].mxu0 }
 0x6e2   : > { %v1663_v32 = vadd.f32 %v1662_v50, %v1586_v49  ;;  %v1664_v51 = vpop.f32.mrb[9].mxu0  ;;  %v1760_v49 = vpop.permute.xlu0 %1759 }
 0x6e3   : > { %v1665_v9 = vpop.f32.mrb[10].mxu0  ;;  %v1765_v50 = vpop.permute.xlu1 %1764 }
 0x6e4   : > { %v1666_v53 = vadd.f32 %v1665_v9, %v1591_v52  ;;  %v1667_v54 = vpop.f32.mrb[11].mxu0  ;;  %v1677_v10 = vadd.f32 %v1663_v32, %v2630_v48 }
 0x6e6   : > { %v1678_v55 = vadd.f32 %v1666_v53, %v2632_v17 }
 0x6e8   : > { %v1689_v19 = vadd.f32 %v1678_v55, %v1677_v10 }
 0x6e9   : > { %v1670_v56 = vpop.f32.mrb[12].mxu0 }
 0x6ea   : > { %v1671_v20 = vadd.f32 %v1670_v56, %v1596_v11  ;;  %v1672_v57 = vpop.f32.mrb[13].mxu0 }
 0x6eb   : > { %v1673_v13 = vpop.f32.mrb[14].mxu0 }
 0x6ec   : > { %v1679_v58 = vadd.f32 %v1671_v20, %v2634_v18  ;;  %v1674_v23 = vadd.f32 %v1673_v13, %v1601_v22  ;;  %v1675_v21 = vpop.f32.mrb[15].mxu0 }
 0x6ee   : > { %v1690_v25 = vadd.f32 %v1689_v19, %v1679_v58  ;;  %v1680_v59 = vadd.f32 %v1674_v23, %v2636_v24 }
 0x6f0   : > { %v1691_v28 = vadd.f32 %v1690_v25, %v1680_v59 }
 0x6f2   : > { %v1692_v33 = vrot.slane %v1691_v28, 4 }
 0x6f4   : > { %v1693_v60 = vadd.f32 %v1692_v33, %v1691_v28 }
 0x6f6   : > { %v1694_v48 = vrot.slane %v1693_v60, 2 }
 0x6f8   : > { %v1695_v61 = vadd.f32 %v1694_v48, %v1693_v60 }
 0x6fa   : > { %v1696_v17 = vrot.slane %v1695_v61, 1 }
 0x6fc   : > { %v1697_v62 = vadd.f32 %v1696_v17, %v1695_v61 }
 0x6fe   : > { %v1698_v63 = vmul.f32 0.03125, %v1697_v62 }
 0x700   : > { %v1699_v0 = vsub.f32 %v1677_v10, %v1698_v63  ;;  %v1700_v1 = vsub.f32 %v1678_v55, %v1698_v63  ;;  %v1701_v2 = vsub.f32 %v1679_v58, %v1698_v63  ;;  %v1702_v3 = vsub.f32 %v1680_v59, %v1698_v63 }
 0x702   : > { %v1703_v4 = vmul.f32 %v1699_v0, %v1699_v0  ;;  %v1704_v5 = vmul.f32 %v1700_v1, %v1700_v1  ;;  %v1705_v18 = vmul.f32 %v1701_v2, %v1701_v2  ;;  %v1706_v7 = vmul.f32 %v1702_v3, %v1702_v3 }
 0x704   : > { %v1707_v6 = vadd.f32 %v1704_v5, %v1703_v4 }
 0x706   : > { %v1708_v8 = vadd.f32 %v1707_v6, %v1705_v18 }
 0x708   : > { %v1709_v12 = vadd.f32 %v1708_v8, %v1706_v7 }
 0x70a   : > { %v1710_v24 = vrot.slane %v1709_v12, 4 }
 0x70c   : > { %v1711_v14 = vadd.f32 %v1710_v24, %v1709_v12 }
 0x70e   : > { %v1712_v15 = vrot.slane %v1711_v14, 2 }
 0x710   : > { %v1713_v45 = vadd.f32 %v1712_v15, %v1711_v14 }
 0x712   : > { %v1714_v16 = vrot.slane %v1713_v45, 1 }
 0x714   : > { %v1715_v46 = vadd.f32 %v1714_v16, %v1713_v45 }
 0x716   : > { %v1716_v27 = vmul.f32 0.03125, %v1715_v46 }
 0x718   : > { %v1717_v29 = vadd.f32 1e-05, %v1716_v27 }
 0x71a   : > { %2221 = vrsqrt.f32 %v1717_v29 }
 0x724   : > { %v2222_v36 = vpop.eup %2221 }
 0x725   : > { %v1719_v37 = vmul.f32 %v2222_v36, %v1699_v0  ;;  %v1720_v38 = vmul.f32 %v2222_v36, %v1700_v1  ;;  %v1721_v39 = vmul.f32 %v2222_v36, %v1701_v2  ;;  %v1722_v40 = vmul.f32 %v2222_v36, %v1702_v3 }
 0x726   : > { %1781 = sbr.rel (!%p2337_p5) target bundleno = 1845 (0x735), region = 140 }
 0x727   : > { %v1743_v41 = vmul.f32 %v1726_v47, %v1719_v37  ;;  %v1744_v42 = vmul.f32 %v1731_v26, %v1720_v38  ;;  %v1745_v43 = vmul.f32 %v1736_v30, %v1721_v39  ;;  %v1746_v44 = vmul.f32 %v1741_v31, %v1722_v40 }
 0x729   : > { %v1767_v32 = vadd.f32 %v1750_v34, %v1743_v41  ;;  %v1768_v51 = vadd.f32 %v1755_v35, %v1744_v42  ;;  %v1769_v52 = vadd.f32 %v1760_v49, %v1745_v43  ;;  %v1770_v9 = vadd.f32 %v1765_v50, %v1746_v44 }
 0x72b   : > { %1771 = vst [vmem:[%s465_s18] sm:$0xff] %v1767_v32  ;;  %1772 = vst [vmem:[%s465_s18 + $0x8] sm:$0xff] %v1768_v51 }
 0x72c   : > { %1773 = vst [vmem:[%s465_s18 + $0x10] sm:$0xff] %v1769_v52  ;;  %1774 = vst [vmem:[%s465_s18 + $0x18] sm:$0xff] %v1770_v9 }
 0x732   : > { %v1817_v53 = vld [vmem:[%s465_s18] sm:$0xff]  ;;  %v1819_v54 = vld [vmem:[%s465_s18 + $0x8] sm:$0xff] }
 0x733   : > { %v1821_v10 = vld [vmem:[%s465_s18 + $0x10] sm:$0xff]  ;;  %v1823_v55 = vld [vmem:[%s465_s18 + $0x18] sm:$0xff]  ;;  %1818 = vst [vmem:[%s1783_s21] sm:$0xff] %v1817_v53  ;;  %1820 = vst [vmem:[%s1783_s21 + $0x10] sm:$0xff] %v1819_v54 }
 0x734   : > { %1822 = vst [vmem:[%s1783_s21 + $0x20] sm:$0xff] %v1821_v10  ;;  %1824 = vst [vmem:[%s1783_s21 + $0x30] sm:$0xff] %v1823_v55 }
 0x735 PF: > { %p17_p10 = scmp.ge.s32.totalorder %s2320_s17, 4   ;;  %s2718_s13 = smov %s2241_s14 }
 0x736   : > { %s2719_s14 = smov %s2331_s20  ;;  %s2720_s15 = smov %s2320_s17 }
 0x737   :  { %19 = sbr.rel (!%p17_p10) target bundleno = 2 (0x2), region = 217 }

</bundles_post_ra>
